<compile_context>
chip_gen: v5e
topology: v5e:2x2
jax: 0.10.0
libtpu: 0.0.40
codegen_flags: <defaults>
</compile_context>

<pallas_src>
import jax
import jax.numpy as jnp
from jax import lax
from jax.experimental import pallas as pl
from jax.experimental.pallas import tpu as pltpu

EPS = 1e-5
_VMEM_LIMIT = 32 * 1024 * 1024   # portable across v5e/v6e (128 MiB) and v7x (64 MiB/TC)
_ROW_TILE = 512                  # stage-2/3 row tile (multiple of 8, ~85% HBM roofline)


def _round_up(n, m):
    return ((n + m - 1) // m) * m


# ---------------------------------------------------------------------------
# Stage 1 (grid over images): conv1 (1x1) fused with conv2 (3x3) on the
# flattened, zero-padded spatial grid.  The 3x3 conv is three K=3*wd_p matmuls
# (one per kernel row): each contracts a lane-concatenated slab of three
# dx-shifted h1 row-slices against a pre-packed (3*wd_p, wd_p) weight block.
# Also emits masked partial sums for bn2.  h2 written back as bf16.
# ---------------------------------------------------------------------------
def _make_stage1_kernel(H, W, L_out, wd_p):
    Hp, Wp = H + 2, W + 2
    halo = Wp + 1                       # max |flattened row shift| of a 3x3 tap

    def kernel(x_ref, w1_ref, w2_ref, mask_ref, h2_ref, ps_ref, pq_ref):
        # conv1: (L_out, cin_p) @ (cin_p, wd_p), bf16 MXU, f32 accumulate
        h1 = jnp.dot(x_ref[...], w1_ref[...],
                     preferred_element_type=jnp.float32).astype(jnp.bfloat16)

        # halo of zero rows so every 3x3 tap is a plain row-shifted slice
        zpad = jnp.zeros((halo, wd_p), jnp.bfloat16)
        h1e = jnp.concatenate([zpad, h1, zpad], axis=0)     # (L_out + 2*halo, wd_p)

        acc = jnp.zeros((L_out, wd_p), jnp.float32)
        for dy in range(3):                                 # 3 matmuls, K = 3*wd_p
            base = halo + (dy - 1) * Wp - 1
            slab = jnp.concatenate(
                [h1e[base + dx:base + dx + L_out, :] for dx in range(3)],
                axis=1)                                     # (L_out, 3*wd_p) bf16
            acc = acc + jnp.dot(slab, w2_ref[dy],
                                preferred_element_type=jnp.float32)

        # masked one-pass bn2 partial stats from the f32 accumulator;
        # h2 itself is stored unmasked (border rows are stripped at the end).
        m = mask_ref[...]                                   # (L_out, 1) f32
        h2m = acc * m
        h2_ref[...] = acc.astype(jnp.bfloat16)
        ps_ref[...] = jnp.sum(h2m, axis=0, keepdims=True)
        pq_ref[...] = jnp.sum(h2m * acc, axis=0, keepdims=True)

    return kernel


def _stage1(xp, w1_p, w2_packed, mask_img, H, W):
    N, L_out, cin_p = xp.shape
    wd_p = w1_p.shape[1]
    kern = _make_stage1_kernel(H, W, L_out, wd_p)
    return pl.pallas_call(
        kern,
        out_shape=(jax.ShapeDtypeStruct((N, L_out, wd_p), jnp.bfloat16),
                   jax.ShapeDtypeStruct((N, 1, wd_p), jnp.float32),
                   jax.ShapeDtypeStruct((N, 1, wd_p), jnp.float32)),
        grid=(N,),
        in_specs=[pl.BlockSpec((None, L_out, cin_p), lambda n: (n, 0, 0)),
                  pl.BlockSpec((cin_p, wd_p), lambda n: (0, 0)),
                  pl.BlockSpec((3, 3 * wd_p, wd_p), lambda n: (0, 0, 0)),
                  pl.BlockSpec((L_out, 1), lambda n: (0, 0))],
        out_specs=(pl.BlockSpec((None, L_out, wd_p), lambda n: (n, 0, 0)),
                   pl.BlockSpec((None, 1, wd_p), lambda n: (n, 0, 0)),
                   pl.BlockSpec((None, 1, wd_p), lambda n: (n, 0, 0))),
        compiler_params=pltpu.CompilerParams(
            dimension_semantics=("parallel",),
            vmem_limit_bytes=_VMEM_LIMIT),
    )(xp, w1_p, w2_packed, mask_img)


# ---------------------------------------------------------------------------
# Stage 2 (grid over 512-row tiles): bn2 (folded) + conv3, emitting only the
# masked bn3 partial stats.  h3 never touches HBM.
# ---------------------------------------------------------------------------
def _stage2_kernel(h2_ref, mask_ref, s2_ref, t2_ref, w3_ref, ps_ref, pq_ref):
    h2n = h2_ref[...].astype(jnp.float32) * s2_ref[...] + t2_ref[...]
    h3 = jnp.dot(h2n.astype(jnp.bfloat16), w3_ref[...],
                 preferred_element_type=jnp.float32)
    h3m = h3 * mask_ref[...]
    ps_ref[...] = jnp.sum(h3m, axis=0, keepdims=True)
    pq_ref[...] = jnp.sum(h3m * h3, axis=0, keepdims=True)


def _stage2(h2_flat, mask_flat, scale2, shift2, w3_p, tl):
    M, wd_p = h2_flat.shape
    co_p = w3_p.shape[1]
    nt = M // tl
    return pl.pallas_call(
        _stage2_kernel,
        out_shape=(jax.ShapeDtypeStruct((nt, 1, co_p), jnp.float32),
                   jax.ShapeDtypeStruct((nt, 1, co_p), jnp.float32)),
        grid=(nt,),
        in_specs=[pl.BlockSpec((tl, wd_p), lambda i: (i, 0)),
                  pl.BlockSpec((tl, 1), lambda i: (i, 0)),
                  pl.BlockSpec((1, wd_p), lambda i: (0, 0)),
                  pl.BlockSpec((1, wd_p), lambda i: (0, 0)),
                  pl.BlockSpec((wd_p, co_p), lambda i: (0, 0))],
        out_specs=(pl.BlockSpec((None, 1, co_p), lambda i: (i, 0, 0)),
                   pl.BlockSpec((None, 1, co_p), lambda i: (i, 0, 0))),
        compiler_params=pltpu.CompilerParams(
            dimension_semantics=("parallel",),
            vmem_limit_bytes=_VMEM_LIMIT),
    )(h2_flat, mask_flat, scale2, shift2, w3_p)


# ---------------------------------------------------------------------------
# Stage 3 (grid over 512-row tiles): recompute bn2+conv3 from h2 (rides in MXU
# slack of this bandwidth-bound stage), apply bn3 and add the residual read
# straight from the staged xp (no separate residual array).
# ---------------------------------------------------------------------------
def _stage3_kernel(h2_ref, res_ref, s2_ref, t2_ref, s3_ref, t3_ref, w3_ref, o_ref):
    h2n = h2_ref[...].astype(jnp.float32) * s2_ref[...] + t2_ref[...]
    h3 = jnp.dot(h2n.astype(jnp.bfloat16), w3_ref[...],
                 preferred_element_type=jnp.float32)
    o_ref[...] = h3 * s3_ref[...] + t3_ref[...] + res_ref[...].astype(jnp.float32)


def _stage3(h2_flat, res_flat, scale2, shift2, scale3, shift3, w3_p, tl):
    M, wd_p = h2_flat.shape
    co_p = w3_p.shape[1]
    nt = M // tl
    return pl.pallas_call(
        _stage3_kernel,
        out_shape=jax.ShapeDtypeStruct((M, co_p), jnp.float32),
        grid=(nt,),
        in_specs=[pl.BlockSpec((tl, wd_p), lambda i: (i, 0)),
                  pl.BlockSpec((tl, co_p), lambda i: (i, 0)),
                  pl.BlockSpec((1, wd_p), lambda i: (0, 0)),
                  pl.BlockSpec((1, wd_p), lambda i: (0, 0)),
                  pl.BlockSpec((1, co_p), lambda i: (0, 0)),
                  pl.BlockSpec((1, co_p), lambda i: (0, 0)),
                  pl.BlockSpec((wd_p, co_p), lambda i: (0, 0))],
        out_specs=pl.BlockSpec((tl, co_p), lambda i: (i, 0)),
        compiler_params=pltpu.CompilerParams(
            dimension_semantics=("parallel",),
            vmem_limit_bytes=_VMEM_LIMIT),
    )(h2_flat, res_flat, scale2, shift2, scale3, shift3, w3_p)


# ---------------------------------------------------------------------------
# Wrapper: Bottleneck forward (NCHW in / NCHW out, like PyTorch)
# ---------------------------------------------------------------------------
def bottleneck_forward(x_nchw, params):
    x = jnp.transpose(x_nchw, (0, 2, 3, 1))                 # NHWC f32
    N, H, W, cin = x.shape
    Hp, Wp = H + 2, W + 2
    L = Hp * Wp
    M_valid = N * H * W

    w1, w2, w3 = params["w1"], params["w2"], params["w3"]
    width = w1.shape[1]
    cout = w3.shape[1]
    assert cin == cout, "identity residual path requires in_chs == out_chs*expansion"

    cin_p = max(128, _round_up(cin, 128))
    wd_p = max(128, _round_up(width, 128))
    co_p = max(128, _round_up(cout, 128))
    assert cin_p == co_p                                     # identity residual path

    # stage-2/3 row tile; pad the per-image row count so the tile divides exactly
    tl = _ROW_TILE if L >= _ROW_TILE else _round_up(L, 8)
    L_out = _round_up(L, tl)
    M_total = N * L_out

    # lane-dense bf16 weights; 3x3 taps packed per kernel-row with K = 3*wd_p.
    # Padded channels are zero (and their BN gamma/beta are zero) so they stay
    # exactly zero end-to-end.
    w1_p = jnp.zeros((cin_p, wd_p), jnp.bfloat16).at[:cin, :width].set(
        w1.astype(jnp.bfloat16))
    w2_packed = jnp.zeros((3, 3, wd_p, wd_p), jnp.bfloat16).at[
        :, :, :width, :width].set(w2.astype(jnp.bfloat16)).reshape(3, 3 * wd_p, wd_p)
    w3_p = jnp.zeros((wd_p, co_p), jnp.bfloat16).at[:width, :cout].set(
        w3.astype(jnp.bfloat16))
    g2 = jnp.zeros((wd_p,), jnp.float32).at[:width].set(params["g2"].reshape(-1))
    b2 = jnp.zeros((wd_p,), jnp.float32).at[:width].set(params["b2"].reshape(-1))
    g3 = jnp.zeros((co_p,), jnp.float32).at[:cout].set(params["g3"].reshape(-1))
    b3 = jnp.zeros((co_p,), jnp.float32).at[:cout].set(params["b3"].reshape(-1))

    # Single bf16 staging array: spatially zero-padded, flattened per image,
    # lane-padded.  Used as the conv1 input (stage 1) and, via a free reshape,
    # as the residual (stage 3).
    xp = jnp.zeros((N, Hp, Wp, cin_p), jnp.bfloat16).at[
        :, 1:H + 1, 1:W + 1, :cin].set(x.astype(jnp.bfloat16)).reshape(N, L, cin_p)
    if L_out > L:
        xp = jnp.pad(xp, ((0, 0), (0, L_out - L), (0, 0)))

    # validity mask for the padded-grid rows (computed once, not per kernel step)
    rr = jnp.arange(L_out)
    yy, xx = rr // Wp, rr % Wp
    valid = (yy >= 1) & (yy <= H) & (xx >= 1) & (xx <= W)
    mask_img = valid.astype(jnp.float32).reshape(L_out, 1)
    mask_flat = jnp.tile(mask_img, (N, 1))                   # (M_total, 1)

    # ---- stage 1: conv1 + conv2 + masked bn2 partial stats -------------------
    h2, ps2, pq2 = _stage1(xp, w1_p, w2_packed, mask_img, H, W)

    mean2 = ps2.sum(axis=(0, 1)) / M_valid
    var2 = jnp.maximum(pq2.sum(axis=(0, 1)) / M_valid - mean2 * mean2, 0.0)
    scale2 = (g2 * lax.rsqrt(var2 + EPS)).reshape(1, wd_p)
    shift2 = (b2 - mean2 * scale2.reshape(-1)).reshape(1, wd_p)

    h2_flat = h2.reshape(M_total, wd_p)      # free view (padded layout kept)
    xp_flat = xp.reshape(M_total, cin_p)     # free view (residual)

    # ---- stage 2: masked bn3 partial stats (h3 never hits HBM) ---------------
    ps3, pq3 = _stage2(h2_flat, mask_flat, scale2, shift2, w3_p, tl)

    mean3 = ps3.sum(axis=(0, 1)) / M_valid
    var3 = jnp.maximum(pq3.sum(axis=(0, 1)) / M_valid - mean3 * mean3, 0.0)
    scale3 = (g3 * lax.rsqrt(var3 + EPS)).reshape(1, co_p)
    shift3 = (b3 - mean3 * scale3.reshape(-1)).reshape(1, co_p)

    # ---- stage 3: recompute conv3, apply bn3, add residual -------------------
    out_flat = _stage3(h2_flat, xp_flat, scale2, shift2, scale3, shift3, w3_p, tl)

    # single final layout pass: strip padded rows/lanes + NHWC -> NCHW
    out = out_flat.reshape(N, L_out, co_p)[:, :L, :].reshape(N, Hp, Wp, co_p)
    out = out[:, 1:H + 1, 1:W + 1, :cout]
    return jnp.transpose(out, (0, 3, 1, 2))


# ---------------------------------------------------------------------------
# Pure-JAX reference mirroring the kernel's precision policy: bf16 activation
# storage (x, h1, h2) and bf16 MXU operands, f32 accumulation + f32 BN math.
# ---------------------------------------------------------------------------
def bottleneck_reference(x_nchw, params):
    x = jnp.transpose(x_nchw, (0, 2, 3, 1))
    xb = x.astype(jnp.bfloat16)
    w1 = params["w1"].astype(jnp.bfloat16)
    w2 = params["w2"].astype(jnp.bfloat16)
    w3 = params["w3"].astype(jnp.bfloat16)

    h1 = jnp.einsum("nhwc,cd->nhwd", xb, w1,
                    preferred_element_type=jnp.float32).astype(jnp.bfloat16)
    h2 = lax.conv_general_dilated(h1, w2, (1, 1), "SAME",
                                  dimension_numbers=("NHWC", "HWIO", "NHWC"),
                                  preferred_element_type=jnp.float32)

    mu2 = h2.mean(axis=(0, 1, 2))
    var2 = h2.var(axis=(0, 1, 2))
    s2 = params["g2"].reshape(-1) * lax.rsqrt(var2 + EPS)
    t2 = params["b2"].reshape(-1) - mu2 * s2
    h2n = h2.astype(jnp.bfloat16).astype(jnp.float32) * s2 + t2

    h3 = jnp.einsum("nhwc,cd->nhwd", h2n.astype(jnp.bfloat16), w3,
                    preferred_element_type=jnp.float32)
    mu3 = h3.mean(axis=(0, 1, 2))
    var3 = h3.var(axis=(0, 1, 2))
    s3 = params["g3"].reshape(-1) * lax.rsqrt(var3 + EPS)
    t3 = params["b3"].reshape(-1) - mu3 * s3
    out = h3 * s3 + t3 + xb.astype(jnp.float32)
    return jnp.transpose(out, (0, 3, 1, 2))


# ---------------------------------------------------------------------------
def make_params(key, in_chs, out_chs, base_width=64, expansion=4):
    width = int(out_chs * base_width // 64)
    cout = out_chs * expansion
    ks = jax.random.split(key, 7)
    return {
        "w1": 0.2 * jax.random.normal(ks[0], (in_chs, width), jnp.float32),
        "w2": 0.2 * jax.random.normal(ks[1], (3, 3, width, width), jnp.float32),
        "w3": 0.2 * jax.random.normal(ks[2], (width, cout), jnp.float32),
        "g2": (1.0 + 0.1 * jax.random.normal(ks[3], (1, width), jnp.float32)),
        "b2": 0.1 * jax.random.normal(ks[4], (1, width), jnp.float32),
        "g3": (1.0 + 0.1 * jax.random.normal(ks[5], (1, cout), jnp.float32)),
        "b3": 0.1 * jax.random.normal(ks[6], (1, cout), jnp.float32),
    }


if __name__ == "__main__":
    key = jax.random.PRNGKey(0)
    k_x, k_p = jax.random.split(key)

    # small config: out_chs=4 -> width=4, expansion*out_chs=16 == in_chs
    # (identity residual path: downsample=None, stride=1)
    N, in_chs, H, W = 2, 16, 8, 8
    x = jax.random.normal(k_x, (N, in_chs, H, W), jnp.float32)   # NCHW like PyTorch
    params = make_params(k_p, in_chs=in_chs, out_chs=4)

    fwd = jax.jit(bottleneck_forward)
    out = jax.block_until_ready(fwd(x, params))

    ref = bottleneck_reference(x, params)
    assert out.shape == (N, in_chs, H, W), out.shape
    err = float(jnp.max(jnp.abs(out - ref)))
    assert err < 5e-3, err

    print("KERNEL_OK")
</pallas_src>

<mosaic_0001>
module attributes {stable_mosaic.version = 11 : i64} {
  func.func @kernel(%arg0: i32, %arg1: memref<1x104x128xbf16, #tpu.memory_space<vmem>>, %arg2: memref<128x128xbf16, #tpu.memory_space<vmem>>, %arg3: memref<3x384x128xbf16, #tpu.memory_space<vmem>>, %arg4: memref<104x1xf32, #tpu.memory_space<vmem>>, %arg5: memref<1x104x128xbf16, #tpu.memory_space<vmem>>, %arg6: memref<1x1x128xf32, #tpu.memory_space<vmem>>, %arg7: memref<1x1x128xf32, #tpu.memory_space<vmem>>) attributes {dimension_semantics = [#tpu.dimension_semantics<parallel>], iteration_bounds = array<i64: 2>, scalar_prefetch = 0 : i64, scratch_operands = 0 : i64, tpu.core_type = #tpu.core_type<tc>, window_params = [{transform_indices = @transform_0, window_bounds = array<i64: 1, 104, 128>}, {pipeline_mode = #tpu.pipeline_mode<synchronous>, transform_indices = @transform_1, window_bounds = array<i64: 128, 128>}, {pipeline_mode = #tpu.pipeline_mode<synchronous>, transform_indices = @transform_2, window_bounds = array<i64: 3, 384, 128>}, {pipeline_mode = #tpu.pipeline_mode<synchronous>, transform_indices = @transform_3, window_bounds = array<i64: 104, 1>}, {transform_indices = @transform_4, window_bounds = array<i64: 1, 104, 128>}, {transform_indices = @transform_5, window_bounds = array<i64: 1, 1, 128>}, {transform_indices = @transform_6, window_bounds = array<i64: 1, 1, 128>}]} {
    %c0 = arith.constant 0 : index
    %c0_0 = arith.constant 0 : index
    %c0_1 = arith.constant 0 : index
    %0 = vector.load %arg1[%c0, %c0_0, %c0_1] : memref<1x104x128xbf16, #tpu.memory_space<vmem>>, vector<1x104x128xbf16>
    %1 = vector.shape_cast %0 : vector<1x104x128xbf16> to vector<104x128xbf16>
    %c0_2 = arith.constant 0 : index
    %c0_3 = arith.constant 0 : index
    %2 = vector.load %arg2[%c0_2, %c0_3] : memref<128x128xbf16, #tpu.memory_space<vmem>>, vector<128x128xbf16>
    %cst = arith.constant dense<0.000000e+00> : vector<104x128xf32>
    %3 = tpu.matmul %1, %2, %cst {dimension_numbers = #tpu.dot_dimension_numbers<[1], [0], [0], [1], [0, 0, 1, 1], [], []>} : vector<104x128xbf16>, vector<128x128xbf16>, vector<104x128xf32> -> vector<104x128xf32>
    %4 = arith.truncf %3 : vector<104x128xf32> to vector<104x128xbf16>
    %cst_4 = arith.constant 0.000000e+00 : bf16
    %5 = vector.broadcast %cst_4 : bf16 to vector<11x128xbf16>
    %6 = tpu.concatenate %5, %4, %5 in 0 : vector<11x128xbf16>, vector<104x128xbf16>, vector<11x128xbf16> -> vector<126x128xbf16>
    %cst_5 = arith.constant 0.000000e+00 : f32
    %7 = vector.broadcast %cst_5 : f32 to vector<104x128xf32>
    %8 = vector.extract_strided_slice %6 {offsets = [0, 0], sizes = [104, 128], strides = [1, 1]} : vector<126x128xbf16> to vector<104x128xbf16>
    %9 = vector.extract_strided_slice %6 {offsets = [1, 0], sizes = [104, 128], strides = [1, 1]} : vector<126x128xbf16> to vector<104x128xbf16>
    %10 = vector.extract_strided_slice %6 {offsets = [2, 0], sizes = [104, 128], strides = [1, 1]} : vector<126x128xbf16> to vector<104x128xbf16>
    %11 = tpu.concatenate %8, %9, %10 in 1 : vector<104x128xbf16>, vector<104x128xbf16>, vector<104x128xbf16> -> vector<104x384xbf16>
    %c0_6 = arith.constant 0 : index
    %c0_7 = arith.constant 0 : index
    %c0_8 = arith.constant 0 : index
    %12 = vector.load %arg3[%c0_6, %c0_7, %c0_8] : memref<3x384x128xbf16, #tpu.memory_space<vmem>>, vector<1x384x128xbf16>
    %13 = vector.shape_cast %12 : vector<1x384x128xbf16> to vector<384x128xbf16>
    %cst_9 = arith.constant dense<0.000000e+00> : vector<104x128xf32>
    %14 = tpu.matmul %11, %13, %cst_9 {dimension_numbers = #tpu.dot_dimension_numbers<[1], [0], [0], [1], [0, 0, 1, 1], [], []>} : vector<104x384xbf16>, vector<384x128xbf16>, vector<104x128xf32> -> vector<104x128xf32>
    %15 = arith.addf %7, %14 : vector<104x128xf32>
    %16 = vector.extract_strided_slice %6 {offsets = [10, 0], sizes = [104, 128], strides = [1, 1]} : vector<126x128xbf16> to vector<104x128xbf16>
    %17 = vector.extract_strided_slice %6 {offsets = [11, 0], sizes = [104, 128], strides = [1, 1]} : vector<126x128xbf16> to vector<104x128xbf16>
    %18 = vector.extract_strided_slice %6 {offsets = [12, 0], sizes = [104, 128], strides = [1, 1]} : vector<126x128xbf16> to vector<104x128xbf16>
    %19 = tpu.concatenate %16, %17, %18 in 1 : vector<104x128xbf16>, vector<104x128xbf16>, vector<104x128xbf16> -> vector<104x384xbf16>
    %c1 = arith.constant 1 : index
    %c0_10 = arith.constant 0 : index
    %c0_11 = arith.constant 0 : index
    %20 = vector.load %arg3[%c1, %c0_10, %c0_11] : memref<3x384x128xbf16, #tpu.memory_space<vmem>>, vector<1x384x128xbf16>
    %21 = vector.shape_cast %20 : vector<1x384x128xbf16> to vector<384x128xbf16>
    %cst_12 = arith.constant dense<0.000000e+00> : vector<104x128xf32>
    %22 = tpu.matmul %19, %21, %cst_12 {dimension_numbers = #tpu.dot_dimension_numbers<[1], [0], [0], [1], [0, 0, 1, 1], [], []>} : vector<104x384xbf16>, vector<384x128xbf16>, vector<104x128xf32> -> vector<104x128xf32>
    %23 = arith.addf %15, %22 : vector<104x128xf32>
    %24 = vector.extract_strided_slice %6 {offsets = [20, 0], sizes = [104, 128], strides = [1, 1]} : vector<126x128xbf16> to vector<104x128xbf16>
    %25 = vector.extract_strided_slice %6 {offsets = [21, 0], sizes = [104, 128], strides = [1, 1]} : vector<126x128xbf16> to vector<104x128xbf16>
    %26 = vector.extract_strided_slice %6 {offsets = [22, 0], sizes = [104, 128], strides = [1, 1]} : vector<126x128xbf16> to vector<104x128xbf16>
    %27 = tpu.concatenate %24, %25, %26 in 1 : vector<104x128xbf16>, vector<104x128xbf16>, vector<104x128xbf16> -> vector<104x384xbf16>
    %c2 = arith.constant 2 : index
    %c0_13 = arith.constant 0 : index
    %c0_14 = arith.constant 0 : index
    %28 = vector.load %arg3[%c2, %c0_13, %c0_14] : memref<3x384x128xbf16, #tpu.memory_space<vmem>>, vector<1x384x128xbf16>
    %29 = vector.shape_cast %28 : vector<1x384x128xbf16> to vector<384x128xbf16>
    %cst_15 = arith.constant dense<0.000000e+00> : vector<104x128xf32>
    %30 = tpu.matmul %27, %29, %cst_15 {dimension_numbers = #tpu.dot_dimension_numbers<[1], [0], [0], [1], [0, 0, 1, 1], [], []>} : vector<104x384xbf16>, vector<384x128xbf16>, vector<104x128xf32> -> vector<104x128xf32>
    %31 = arith.addf %23, %30 : vector<104x128xf32>
    %c0_16 = arith.constant 0 : index
    %c0_17 = arith.constant 0 : index
    %32 = vector.load %arg4[%c0_16, %c0_17] : memref<104x1xf32, #tpu.memory_space<vmem>>, vector<104x1xf32>
    %33 = vector.broadcast %32 : vector<104x1xf32> to vector<104x128xf32>
    %34 = arith.mulf %31, %33 : vector<104x128xf32>
    %35 = arith.truncf %31 : vector<104x128xf32> to vector<104x128xbf16>
    %c0_18 = arith.constant 0 : index
    %c0_19 = arith.constant 0 : index
    %c0_20 = arith.constant 0 : index
    %36 = vector.load %arg5[%c0_18, %c0_19, %c0_20] : memref<1x104x128xbf16, #tpu.memory_space<vmem>>, vector<1x104x128xbf16>
    %37 = vector.shape_cast %36 : vector<1x104x128xbf16> to vector<104x128xbf16>
    %38 = vector.shape_cast %35 : vector<104x128xbf16> to vector<1x104x128xbf16>
    tpu.vector_store %arg5[%c0_18, %c0_19, %c0_20], %38 {strides = array<i32>} : memref<1x104x128xbf16, #tpu.memory_space<vmem>>, vector<1x104x128xbf16>,
    %cst_21 = arith.constant dense<0.000000e+00> : vector<128xf32>
    %39 = vector.multi_reduction <add>, %34, %cst_21 [0] : vector<104x128xf32> to vector<128xf32>
    %40 = vector.shape_cast %39 : vector<128xf32> to vector<1x128xf32>
    %c0_22 = arith.constant 0 : index
    %c0_23 = arith.constant 0 : index
    %c0_24 = arith.constant 0 : index
    %41 = vector.load %arg6[%c0_22, %c0_23, %c0_24] : memref<1x1x128xf32, #tpu.memory_space<vmem>>, vector<1x1x128xf32>
    %42 = vector.shape_cast %41 : vector<1x1x128xf32> to vector<1x128xf32>
    %43 = vector.shape_cast %40 : vector<1x128xf32> to vector<1x1x128xf32>
    tpu.vector_store %arg6[%c0_22, %c0_23, %c0_24], %43 {strides = array<i32>} : memref<1x1x128xf32, #tpu.memory_space<vmem>>, vector<1x1x128xf32>,
    %44 = arith.mulf %34, %31 : vector<104x128xf32>
    %cst_25 = arith.constant dense<0.000000e+00> : vector<128xf32>
    %45 = vector.multi_reduction <add>, %44, %cst_25 [0] : vector<104x128xf32> to vector<128xf32>
    %46 = vector.shape_cast %45 : vector<128xf32> to vector<1x128xf32>
    %c0_26 = arith.constant 0 : index
    %c0_27 = arith.constant 0 : index
    %c0_28 = arith.constant 0 : index
    %47 = vector.load %arg7[%c0_26, %c0_27, %c0_28] : memref<1x1x128xf32, #tpu.memory_space<vmem>>, vector<1x1x128xf32>
    %48 = vector.shape_cast %47 : vector<1x1x128xf32> to vector<1x128xf32>
    %49 = vector.shape_cast %46 : vector<1x128xf32> to vector<1x1x128xf32>
    tpu.vector_store %arg7[%c0_26, %c0_27, %c0_28], %49 {strides = array<i32>} : memref<1x1x128xf32, #tpu.memory_space<vmem>>, vector<1x1x128xf32>,
    return
  }
  func.func @transform_0(%arg0: i32) -> (i32, i32, i32) {
    %c0_i32 = arith.constant 0 : i32
    %c0_i32_0 = arith.constant 0 : i32
    %c0_i32_1 = arith.constant 0 : i32
    return %arg0, %c0_i32, %c0_i32_0 : i32, i32, i32
  }
  func.func @transform_1(%arg0: i32) -> (i32, i32) {
    %c0_i32 = arith.constant 0 : i32
    %c0_i32_0 = arith.constant 0 : i32
    %c0_i32_1 = arith.constant 0 : i32
    return %c0_i32, %c0_i32_0 : i32, i32
  }
  func.func @transform_2(%arg0: i32) -> (i32, i32, i32) {
    %c0_i32 = arith.constant 0 : i32
    %c0_i32_0 = arith.constant 0 : i32
    %c0_i32_1 = arith.constant 0 : i32
    %c0_i32_2 = arith.constant 0 : i32
    return %c0_i32, %c0_i32_0, %c0_i32_1 : i32, i32, i32
  }
  func.func @transform_3(%arg0: i32) -> (i32, i32) {
    %c0_i32 = arith.constant 0 : i32
    %c0_i32_0 = arith.constant 0 : i32
    %c0_i32_1 = arith.constant 0 : i32
    return %c0_i32, %c0_i32_0 : i32, i32
  }
  func.func @transform_4(%arg0: i32) -> (i32, i32, i32) {
    %c0_i32 = arith.constant 0 : i32
    %c0_i32_0 = arith.constant 0 : i32
    %c0_i32_1 = arith.constant 0 : i32
    return %arg0, %c0_i32, %c0_i32_0 : i32, i32, i32
  }
  func.func @transform_5(%arg0: i32) -> (i32, i32, i32) {
    %c0_i32 = arith.constant 0 : i32
    %c0_i32_0 = arith.constant 0 : i32
    %c0_i32_1 = arith.constant 0 : i32
    return %arg0, %c0_i32, %c0_i32_0 : i32, i32, i32
  }
  func.func @transform_6(%arg0: i32) -> (i32, i32, i32) {
    %c0_i32 = arith.constant 0 : i32
    %c0_i32_0 = arith.constant 0 : i32
    %c0_i32_1 = arith.constant 0 : i32
    return %arg0, %c0_i32, %c0_i32_0 : i32, i32, i32
  }
}

module attributes {stable_mosaic.version = 11 : i64} {
  func.func @_stage2_kernel(%arg0: i32, %arg1: memref<104x128xbf16, #tpu.memory_space<vmem>>, %arg2: memref<104x1xf32, #tpu.memory_space<vmem>>, %arg3: memref<1x128xf32, #tpu.memory_space<vmem>>, %arg4: memref<1x128xf32, #tpu.memory_space<vmem>>, %arg5: memref<128x128xbf16, #tpu.memory_space<vmem>>, %arg6: memref<1x1x128xf32, #tpu.memory_space<vmem>>, %arg7: memref<1x1x128xf32, #tpu.memory_space<vmem>>) attributes {dimension_semantics = [#tpu.dimension_semantics<parallel>], iteration_bounds = array<i64: 2>, scalar_prefetch = 0 : i64, scratch_operands = 0 : i64, tpu.core_type = #tpu.core_type<tc>, window_params = [{transform_indices = @transform_0, window_bounds = array<i64: 104, 128>}, {transform_indices = @transform_1, window_bounds = array<i64: 104, 1>}, {pipeline_mode = #tpu.pipeline_mode<synchronous>, transform_indices = @transform_2, window_bounds = array<i64: 1, 128>}, {pipeline_mode = #tpu.pipeline_mode<synchronous>, transform_indices = @transform_3, window_bounds = array<i64: 1, 128>}, {pipeline_mode = #tpu.pipeline_mode<synchronous>, transform_indices = @transform_4, window_bounds = array<i64: 128, 128>}, {transform_indices = @transform_5, window_bounds = array<i64: 1, 1, 128>}, {transform_indices = @transform_6, window_bounds = array<i64: 1, 1, 128>}]} {
    %c0 = arith.constant 0 : index
    %c0_0 = arith.constant 0 : index
    %0 = vector.load %arg1[%c0, %c0_0] : memref<104x128xbf16, #tpu.memory_space<vmem>>, vector<104x128xbf16>
    %1 = arith.extf %0 : vector<104x128xbf16> to vector<104x128xf32>
    %c0_1 = arith.constant 0 : index
    %c0_2 = arith.constant 0 : index
    %2 = vector.load %arg3[%c0_1, %c0_2] : memref<1x128xf32, #tpu.memory_space<vmem>>, vector<1x128xf32>
    %3 = vector.broadcast %2 : vector<1x128xf32> to vector<104x128xf32>
    %4 = arith.mulf %1, %3 : vector<104x128xf32>
    %c0_3 = arith.constant 0 : index
    %c0_4 = arith.constant 0 : index
    %5 = vector.load %arg4[%c0_3, %c0_4] : memref<1x128xf32, #tpu.memory_space<vmem>>, vector<1x128xf32>
    %6 = vector.broadcast %5 : vector<1x128xf32> to vector<104x128xf32>
    %7 = arith.addf %4, %6 : vector<104x128xf32>
    %8 = arith.truncf %7 : vector<104x128xf32> to vector<104x128xbf16>
    %c0_5 = arith.constant 0 : index
    %c0_6 = arith.constant 0 : index
    %9 = vector.load %arg5[%c0_5, %c0_6] : memref<128x128xbf16, #tpu.memory_space<vmem>>, vector<128x128xbf16>
    %cst = arith.constant dense<0.000000e+00> : vector<104x128xf32>
    %10 = tpu.matmul %8, %9, %cst {dimension_numbers = #tpu.dot_dimension_numbers<[1], [0], [0], [1], [0, 0, 1, 1], [], []>} : vector<104x128xbf16>, vector<128x128xbf16>, vector<104x128xf32> -> vector<104x128xf32>
    %c0_7 = arith.constant 0 : index
    %c0_8 = arith.constant 0 : index
    %11 = vector.load %arg2[%c0_7, %c0_8] : memref<104x1xf32, #tpu.memory_space<vmem>>, vector<104x1xf32>
    %12 = vector.broadcast %11 : vector<104x1xf32> to vector<104x128xf32>
    %13 = arith.mulf %10, %12 : vector<104x128xf32>
    %cst_9 = arith.constant dense<0.000000e+00> : vector<128xf32>
    %14 = vector.multi_reduction <add>, %13, %cst_9 [0] : vector<104x128xf32> to vector<128xf32>
    %15 = vector.shape_cast %14 : vector<128xf32> to vector<1x128xf32>
    %c0_10 = arith.constant 0 : index
    %c0_11 = arith.constant 0 : index
    %c0_12 = arith.constant 0 : index
    %16 = vector.load %arg6[%c0_10, %c0_11, %c0_12] : memref<1x1x128xf32, #tpu.memory_space<vmem>>, vector<1x1x128xf32>
    %17 = vector.shape_cast %16 : vector<1x1x128xf32> to vector<1x128xf32>
    %18 = vector.shape_cast %15 : vector<1x128xf32> to vector<1x1x128xf32>
    tpu.vector_store %arg6[%c0_10, %c0_11, %c0_12], %18 {strides = array<i32>} : memref<1x1x128xf32, #tpu.memory_space<vmem>>, vector<1x1x128xf32>,
    %19 = arith.mulf %13, %10 : vector<104x128xf32>
    %cst_13 = arith.constant dense<0.000000e+00> : vector<128xf32>
    %20 = vector.multi_reduction <add>, %19, %cst_13 [0] : vector<104x128xf32> to vector<128xf32>
    %21 = vector.shape_cast %20 : vector<128xf32> to vector<1x128xf32>
    %c0_14 = arith.constant 0 : index
    %c0_15 = arith.constant 0 : index
    %c0_16 = arith.constant 0 : index
    %22 = vector.load %arg7[%c0_14, %c0_15, %c0_16] : memref<1x1x128xf32, #tpu.memory_space<vmem>>, vector<1x1x128xf32>
    %23 = vector.shape_cast %22 : vector<1x1x128xf32> to vector<1x128xf32>
    %24 = vector.shape_cast %21 : vector<1x128xf32> to vector<1x1x128xf32>
    tpu.vector_store %arg7[%c0_14, %c0_15, %c0_16], %24 {strides = array<i32>} : memref<1x1x128xf32, #tpu.memory_space<vmem>>, vector<1x1x128xf32>,
    return
  }
  func.func @transform_0(%arg0: i32) -> (i32, i32) {
    %c0_i32 = arith.constant 0 : i32
    %c0_i32_0 = arith.constant 0 : i32
    return %arg0, %c0_i32 : i32, i32
  }
  func.func @transform_1(%arg0: i32) -> (i32, i32) {
    %c0_i32 = arith.constant 0 : i32
    %c0_i32_0 = arith.constant 0 : i32
    return %arg0, %c0_i32 : i32, i32
  }
  func.func @transform_2(%arg0: i32) -> (i32, i32) {
    %c0_i32 = arith.constant 0 : i32
    %c0_i32_0 = arith.constant 0 : i32
    %c0_i32_1 = arith.constant 0 : i32
    return %c0_i32, %c0_i32_0 : i32, i32
  }
  func.func @transform_3(%arg0: i32) -> (i32, i32) {
    %c0_i32 = arith.constant 0 : i32
    %c0_i32_0 = arith.constant 0 : i32
    %c0_i32_1 = arith.constant 0 : i32
    return %c0_i32, %c0_i32_0 : i32, i32
  }
  func.func @transform_4(%arg0: i32) -> (i32, i32) {
    %c0_i32 = arith.constant 0 : i32
    %c0_i32_0 = arith.constant 0 : i32
    %c0_i32_1 = arith.constant 0 : i32
    return %c0_i32, %c0_i32_0 : i32, i32
  }
  func.func @transform_5(%arg0: i32) -> (i32, i32, i32) {
    %c0_i32 = arith.constant 0 : i32
    %c0_i32_0 = arith.constant 0 : i32
    %c0_i32_1 = arith.constant 0 : i32
    return %arg0, %c0_i32, %c0_i32_0 : i32, i32, i32
  }
  func.func @transform_6(%arg0: i32) -> (i32, i32, i32) {
    %c0_i32 = arith.constant 0 : i32
    %c0_i32_0 = arith.constant 0 : i32
    %c0_i32_1 = arith.constant 0 : i32
    return %arg0, %c0_i32, %c0_i32_0 : i32, i32, i32
  }
}

module attributes {stable_mosaic.version = 11 : i64} {
  func.func @_stage3_kernel(%arg0: i32, %arg1: memref<104x128xbf16, #tpu.memory_space<vmem>>, %arg2: memref<104x128xbf16, #tpu.memory_space<vmem>>, %arg3: memref<1x128xf32, #tpu.memory_space<vmem>>, %arg4: memref<1x128xf32, #tpu.memory_space<vmem>>, %arg5: memref<1x128xf32, #tpu.memory_space<vmem>>, %arg6: memref<1x128xf32, #tpu.memory_space<vmem>>, %arg7: memref<128x128xbf16, #tpu.memory_space<vmem>>, %arg8: memref<104x128xf32, #tpu.memory_space<vmem>>) attributes {dimension_semantics = [#tpu.dimension_semantics<parallel>], iteration_bounds = array<i64: 2>, scalar_prefetch = 0 : i64, scratch_operands = 0 : i64, tpu.core_type = #tpu.core_type<tc>, window_params = [{transform_indices = @transform_0, window_bounds = array<i64: 104, 128>}, {transform_indices = @transform_1, window_bounds = array<i64: 104, 128>}, {pipeline_mode = #tpu.pipeline_mode<synchronous>, transform_indices = @transform_2, window_bounds = array<i64: 1, 128>}, {pipeline_mode = #tpu.pipeline_mode<synchronous>, transform_indices = @transform_3, window_bounds = array<i64: 1, 128>}, {pipeline_mode = #tpu.pipeline_mode<synchronous>, transform_indices = @transform_4, window_bounds = array<i64: 1, 128>}, {pipeline_mode = #tpu.pipeline_mode<synchronous>, transform_indices = @transform_5, window_bounds = array<i64: 1, 128>}, {pipeline_mode = #tpu.pipeline_mode<synchronous>, transform_indices = @transform_6, window_bounds = array<i64: 128, 128>}, {transform_indices = @transform_7, window_bounds = array<i64: 104, 128>}]} {
    %c0 = arith.constant 0 : index
    %c0_0 = arith.constant 0 : index
    %0 = vector.load %arg1[%c0, %c0_0] : memref<104x128xbf16, #tpu.memory_space<vmem>>, vector<104x128xbf16>
    %1 = arith.extf %0 : vector<104x128xbf16> to vector<104x128xf32>
    %c0_1 = arith.constant 0 : index
    %c0_2 = arith.constant 0 : index
    %2 = vector.load %arg3[%c0_1, %c0_2] : memref<1x128xf32, #tpu.memory_space<vmem>>, vector<1x128xf32>
    %3 = vector.broadcast %2 : vector<1x128xf32> to vector<104x128xf32>
    %4 = arith.mulf %1, %3 : vector<104x128xf32>
    %c0_3 = arith.constant 0 : index
    %c0_4 = arith.constant 0 : index
    %5 = vector.load %arg4[%c0_3, %c0_4] : memref<1x128xf32, #tpu.memory_space<vmem>>, vector<1x128xf32>
    %6 = vector.broadcast %5 : vector<1x128xf32> to vector<104x128xf32>
    %7 = arith.addf %4, %6 : vector<104x128xf32>
    %8 = arith.truncf %7 : vector<104x128xf32> to vector<104x128xbf16>
    %c0_5 = arith.constant 0 : index
    %c0_6 = arith.constant 0 : index
    %9 = vector.load %arg7[%c0_5, %c0_6] : memref<128x128xbf16, #tpu.memory_space<vmem>>, vector<128x128xbf16>
    %cst = arith.constant dense<0.000000e+00> : vector<104x128xf32>
    %10 = tpu.matmul %8, %9, %cst {dimension_numbers = #tpu.dot_dimension_numbers<[1], [0], [0], [1], [0, 0, 1, 1], [], []>} : vector<104x128xbf16>, vector<128x128xbf16>, vector<104x128xf32> -> vector<104x128xf32>
    %c0_7 = arith.constant 0 : index
    %c0_8 = arith.constant 0 : index
    %11 = vector.load %arg5[%c0_7, %c0_8] : memref<1x128xf32, #tpu.memory_space<vmem>>, vector<1x128xf32>
    %12 = vector.broadcast %11 : vector<1x128xf32> to vector<104x128xf32>
    %13 = arith.mulf %10, %12 : vector<104x128xf32>
    %c0_9 = arith.constant 0 : index
    %c0_10 = arith.constant 0 : index
    %14 = vector.load %arg6[%c0_9, %c0_10] : memref<1x128xf32, #tpu.memory_space<vmem>>, vector<1x128xf32>
    %15 = vector.broadcast %14 : vector<1x128xf32> to vector<104x128xf32>
    %16 = arith.addf %13, %15 : vector<104x128xf32>
    %c0_11 = arith.constant 0 : index
    %c0_12 = arith.constant 0 : index
    %17 = vector.load %arg2[%c0_11, %c0_12] : memref<104x128xbf16, #tpu.memory_space<vmem>>, vector<104x128xbf16>
    %18 = arith.extf %17 : vector<104x128xbf16> to vector<104x128xf32>
    %19 = arith.addf %16, %18 : vector<104x128xf32>
    %c0_13 = arith.constant 0 : index
    %c0_14 = arith.constant 0 : index
    %20 = vector.load %arg8[%c0_13, %c0_14] : memref<104x128xf32, #tpu.memory_space<vmem>>, vector<104x128xf32>
    tpu.vector_store %arg8[%c0_13, %c0_14], %19 {strides = array<i32>} : memref<104x128xf32, #tpu.memory_space<vmem>>, vector<104x128xf32>,
    return
  }
  func.func @transform_0(%arg0: i32) -> (i32, i32) {
    %c0_i32 = arith.constant 0 : i32
    %c0_i32_0 = arith.constant 0 : i32
    return %arg0, %c0_i32 : i32, i32
  }
  func.func @transform_1(%arg0: i32) -> (i32, i32) {
    %c0_i32 = arith.constant 0 : i32
    %c0_i32_0 = arith.constant 0 : i32
    return %arg0, %c0_i32 : i32, i32
  }
  func.func @transform_2(%arg0: i32) -> (i32, i32) {
    %c0_i32 = arith.constant 0 : i32
    %c0_i32_0 = arith.constant 0 : i32
    %c0_i32_1 = arith.constant 0 : i32
    return %c0_i32, %c0_i32_0 : i32, i32
  }
  func.func @transform_3(%arg0: i32) -> (i32, i32) {
    %c0_i32 = arith.constant 0 : i32
    %c0_i32_0 = arith.constant 0 : i32
    %c0_i32_1 = arith.constant 0 : i32
    return %c0_i32, %c0_i32_0 : i32, i32
  }
  func.func @transform_4(%arg0: i32) -> (i32, i32) {
    %c0_i32 = arith.constant 0 : i32
    %c0_i32_0 = arith.constant 0 : i32
    %c0_i32_1 = arith.constant 0 : i32
    return %c0_i32, %c0_i32_0 : i32, i32
  }
  func.func @transform_5(%arg0: i32) -> (i32, i32) {
    %c0_i32 = arith.constant 0 : i32
    %c0_i32_0 = arith.constant 0 : i32
    %c0_i32_1 = arith.constant 0 : i32
    return %c0_i32, %c0_i32_0 : i32, i32
  }
  func.func @transform_6(%arg0: i32) -> (i32, i32) {
    %c0_i32 = arith.constant 0 : i32
    %c0_i32_0 = arith.constant 0 : i32
    %c0_i32_1 = arith.constant 0 : i32
    return %c0_i32, %c0_i32_0 : i32, i32
  }
  func.func @transform_7(%arg0: i32) -> (i32, i32) {
    %c0_i32 = arith.constant 0 : i32
    %c0_i32_0 = arith.constant 0 : i32
    return %arg0, %c0_i32 : i32, i32
  }
}

</mosaic_0001>

<bundles_post_ra>
// kernel: bottleneck_forward.4
= control target key start
LH: loop header
LB: loop body
LE: loop exit
PB: predicated region body
PF: predicated region fallthrough
CT: control target
= control target key end

     0   :  { %s841_s21 = smov 0   ;;  %s953_s0 = inlined_call_operand.vmem [shape: bf16[208,128], index: 0, kind: input, shape index: {}]   ;;  %s954_s1 = inlined_call_operand.vmem [shape: f32[208,1], index: 1, kind: input, shape index: {}]   ;;  %s955_s2 = inlined_call_operand.vmem [shape: f32[1,128], index: 2, kind: input, shape index: {}]   ;;  %s956_s3 = inlined_call_operand.vmem [shape: f32[1,128], index: 3, kind: input, shape index: {}]   ;;  %s957_s4 = inlined_call_operand.vmem [shape: bf16[128,128], index: 4, kind: input, shape index: {}]   ;;  %s958_s5 = inlined_call_operand.vmem [shape: f32[2,1,128], index: 5, kind: output, shape index: {0}]   ;;  %s959_s6 = inlined_call_operand.vmem [shape: f32[2,1,128], index: 6, kind: output, shape index: {1}]  }
   0x1 LB: > { %s847_s22 = sadd.s32 4294967295, %s803_s21   ;;  %p685_p0 = scmp.ge.s32.totalorder %s803_s21, 1  ;;  %s803_s21 = sphi %s841_s21, %s17_s21  }
   0x2   : > { %p227_p1 = scmp.lt.s32.totalorder %s803_s21, 3 }
   0x4   : > { %p228_p2 = pnand %p685_p0, %p227_p1 }
   0x5   : > { %s263_s25 = smul.u32 (!%p228_p2), 13, %s847_s22  ;;  %p275_p4 = scmp.lt.s32.totalorder (!%p228_p2), %s847_s22, 1 }
   0x6   : > { %231 = sbr.rel (%p228_p2) target bundleno = 227 (0xe3), region = 40 }
   0x7   : > { %p264_p3 = scmp.lt.s32.totalorder (!%p228_p2), %s263_s25, 25 }
   0xb   : > { %v729_v0 = vld [vmem:[%s957_s4 + $0x38] sm:$0xff]  ;;  %v805_v1 = vmov 0   ;;  %v728_v2 = vld [vmem:[%s957_s4 + $0x30] sm:$0xff]  ;;  %s961_s25 = smov (!%p264_p3, %s263_s25), 25  ;;  %v727_v3 = vld [vmem:[%s957_s4 + $0x28] sm:$0xff]  ;;  %s963_s22 = smov (!%p275_p4, %s847_s22), 1 }
   0xc   : > { %792 = vset.pattern.permute.xlu0 %v805_v1  ;;  %793 = vset.pattern.permute.xlu1 %v805_v1  ;;  %s687_s30 = sshll.u32 %s961_s25, 3  ;;  %s686_s10 = sshll.u32 %s961_s25, 2  ;;  %v726_v6 = vld [vmem:[%s957_s4 + $0x20] sm:$0xff]  ;;  %v725_v7 = vld [vmem:[%s957_s4 + $0x18] sm:$0xff]  ;;  %v724_v20 = vld [vmem:[%s957_s4 + $0x10] sm:$0xff] }
   0xd   : > { %412 = vmatpush.bf16.msra.mxu0 %v729_v0  ;;  %759 = vmatpush.bf16.msra.mxu1 %v729_v0  ;;  %s864_s9 = scalar_lea.vmem %s954_s1, %s687_s30  ;;  %s874_s15 = scalar_lea.vmem %s953_s0, %s686_s10  ;;  %v888_v16 = vld [vmem:[%s955_s2] ss:$0 sm:$0xff]  ;;  %v723_v31 = vld [vmem:[%s957_s4 + $0x8] sm:$0xff] }
   0xe   : > { %760 = vmatpush.bf16.msra.mxu2 %v729_v0  ;;  %761 = vmatpush.bf16.msra.mxu3 %v729_v0  ;;  %v455_v4 = vld [vmem:[%s864_s9] sm:$0xff]  ;;  %v457_v5 = vld [vmem:[%s864_s9 + $0x10] sm:$0xff]  ;;  %v456_v8 = vld [vmem:[%s864_s9 + $0x8] sm:$0xff]  ;;  %s277_s8 = scalar_lea.vmem %s958_s5, %s963_s22  ;;  %s280_s11 = scalar_lea.vmem %s959_s6, %s963_s22 }
   0xf   : > { %794 = vset.pattern.permute.xlu2 %v805_v1  ;;  %470 = vperm.xlu0 %792, %v455_v4   ;;  %v731_v9 = vld [vmem:[%s874_s15] sm:$0xff]   ;;  %v754_v10 = vld [vmem:[%s874_s15 + $0x8] sm:$0xff]   ;;  %v756_v11 = vld [vmem:[%s874_s15 + $0x18] sm:$0xff]  }
  0x10   : > { %480 = vperm.xlu1 %793, %v457_v5   ;;  %v458_v12 = vld [vmem:[%s864_s9 + $0x18] sm:$0xff]  ;;  %v758_v13 = vld [vmem:[%s874_s15 + $0x28] sm:$0xff]   ;;  %v732_v14 = vunpack.c.l.bf16 %v731_v9  ;;  %v733_v15 = vunpack.c.h.bf16 %v731_v9  ;;  %v736_v17 = vunpack.c.l.bf16 %v754_v10  ;;  %v737_v18 = vunpack.c.h.bf16 %v754_v10  ;;  %v459_v24 = vld [vmem:[%s864_s9 + $0x20] sm:$0xff] }
  0x11   : > { %413 = vmatpush.bf16.msra.mxu0 %v728_v2  ;;  %762 = vmatpush.bf16.msra.mxu1 %v728_v2  ;;  %v744_v19 = vunpack.c.l.bf16 %v756_v11  ;;  %v745_v21 = vunpack.c.h.bf16 %v756_v11  ;;  %v752_v22 = vunpack.c.l.bf16 %v758_v13  ;;  %v753_v23 = vunpack.c.h.bf16 %v758_v13  ;;  %v899_v27 = vld [vmem:[%s956_s3] ss:$0 sm:$0xff]  ;;  %v461_v35 = vld [vmem:[%s864_s9 + $0x30] sm:$0xff]  ;;  %v462_v36 = vld [vmem:[%s864_s9 + $0x38] sm:$0xff] }
  0x12   : > { %763 = vmatpush.bf16.msra.mxu2 %v728_v2  ;;  %764 = vmatpush.bf16.msra.mxu3 %v728_v2  ;;  %v311_v25 = vmul.f32 %v888_v16, %v732_v14  ;;  %v312_v26 = vmul.f32 %v888_v16, %v733_v15  ;;  %v313_v28 = vmul.f32 %v888_v16, %v736_v17  ;;  %v460_v42 = vld [vmem:[%s864_s9 + $0x28] sm:$0xff]  ;;  %v722_v43 = vld [vmem:[%s957_s4] sm:$0xff]  ;;  %v755_v51 = vld [vmem:[%s874_s15 + $0x10] sm:$0xff]  }
  0x13   : > { %490 = vperm.xlu2 %794, %v459_v24   ;;  %v314_v29 = vmul.f32 %v888_v16, %v737_v18  ;;  %v317_v30 = vmul.f32 %v888_v16, %v744_v19  ;;  %v318_v32 = vmul.f32 %v888_v16, %v745_v21  ;;  %v321_v33 = vmul.f32 %v888_v16, %v752_v22  ;;  %v757_v52 = vld [vmem:[%s874_s15 + $0x20] sm:$0xff]   ;;  %v293_v53 = vld [vmem:[%s874_s15 + $0x30] sm:$0xf]  ;;  %v464_v54 = vld [vmem:[%s864_s9 + $0x48] sm:$0xff] }
  0x14   : > { %v322_v34 = vmul.f32 %v888_v16, %v753_v23  ;;  %v328_v37 = vadd.f32 %v899_v27, %v311_v25  ;;  %v329_v38 = vadd.f32 %v899_v27, %v312_v26  ;;  %v330_v39 = vadd.f32 %v899_v27, %v313_v28  ;;  %v465_v55 = vld [vmem:[%s864_s9 + $0x50] sm:$0xff]  ;;  %v463_v58 = vld [vmem:[%s864_s9 + $0x40] sm:$0xff] }
  0x15   : > { %414 = vmatpush.bf16.msra.mxu0 %v727_v3  ;;  %765 = vmatpush.bf16.msra.mxu1 %v727_v3  ;;  %v331_v40 = vadd.f32 %v899_v27, %v314_v29  ;;  %v334_v41 = vadd.f32 %v899_v27, %v317_v30  ;;  %v335_v44 = vadd.f32 %v899_v27, %v318_v32  ;;  %v740_v56 = vunpack.c.l.bf16 %v755_v51 }
  0x16   : > { %766 = vmatpush.bf16.msra.mxu2 %v727_v3  ;;  %767 = vmatpush.bf16.msra.mxu3 %v727_v3  ;;  %v338_v45 = vadd.f32 %v899_v27, %v321_v33  ;;  %v339_v46 = vadd.f32 %v899_v27, %v322_v34  ;;  %v341_v47 = vpack.c.bf16 %v329_v38, %v328_v37  ;;  %v741_v57 = vunpack.c.h.bf16 %v755_v51  ;;  %v467_v3 = vld [vmem:[%s864_s9 + $0x60] sm:$0xff] }
  0x17   : > { %475 = vperm.xlu0 %792, %v456_v8   ;;  %v342_v48 = vpack.c.bf16 %v331_v40, %v330_v39  ;;  %v344_v49 = vpack.c.bf16 %v335_v44, %v334_v41  ;;  %v748_v59 = vunpack.c.l.bf16 %v757_v52  ;;  %v749_v60 = vunpack.c.h.bf16 %v757_v52 }
  0x18   : > { %485 = vperm.xlu1 %793, %v458_v12   ;;  %v346_v50 = vpack.c.bf16 %v339_v46, %v338_v45  ;;  %v306_v61 = vunpack.c.l.bf16 %v293_v53  ;;  %v315_v62 = vmul.f32 %v888_v16, %v740_v56  ;;  %v316_v63 = vmul.f32 %v888_v16, %v741_v57 }
  0x19   : > { %415 = vmatpush.bf16.msra.mxu0 %v726_v6  ;;  %768 = vmatpush.bf16.msra.mxu1 %v726_v6  ;;  %v319_v0 = vmul.f32 %v888_v16, %v748_v59  ;;  %v320_v1 = vmul.f32 %v888_v16, %v749_v60 }
  0x1a   : > { %769 = vmatpush.bf16.msra.mxu2 %v726_v6  ;;  %770 = vmatpush.bf16.msra.mxu3 %v726_v6  ;;  %v323_v2 = vmul.f32 %v888_v16, %v306_v61  ;;  %v332_v4 = vadd.f32 %v899_v27, %v315_v62  ;;  %v333_v5 = vadd.f32 %v899_v27, %v316_v63  ;;  %v466_v6 = vld [vmem:[%s864_s9 + $0x58] sm:$0xff] }
  0x1b   : > { %495 = vperm.xlu2 %794, %v460_v42   ;;  %v337_v8 = vadd.f32 %v899_v27, %v320_v1 }
  0x1c   : > { %v340_v9 = vadd.f32 %v899_v27, %v323_v2  ;;  %v343_v10 = vpack.c.bf16 %v333_v5, %v332_v4 }
  0x1d   : > { %416 = vmatpush.bf16.msra.mxu0 %v725_v7  ;;  %771 = vmatpush.bf16.msra.mxu1 %v725_v7 }
  0x1e   : > { %772 = vmatpush.bf16.msra.mxu2 %v725_v7  ;;  %773 = vmatpush.bf16.msra.mxu3 %v725_v7  ;;  %v336_v7 = vadd.f32 %v899_v27, %v319_v0  ;;  %v347_v12 = vpack.c.bf16 %v340_v9, %v340_v9 }
  0x1f   : > { %500 = vperm.xlu0 %792, %v461_v35  }
  0x20   : > { %505 = vperm.xlu1 %793, %v462_v36   ;;  %v345_v11 = vpack.c.bf16 %v337_v8, %v336_v7 }
  0x21   : > { %417 = vmatpush.bf16.msra.mxu0 %v724_v20  ;;  %774 = vmatpush.bf16.msra.mxu1 %v724_v20 }
  0x22   : > { %775 = vmatpush.bf16.msra.mxu2 %v724_v20  ;;  %776 = vmatpush.bf16.msra.mxu3 %v724_v20 }
  0x23   : > { %510 = vperm.xlu2 %794, %v463_v58  }
  0x25   : > { %418 = vmatpush.bf16.msra.mxu0 %v723_v31  ;;  %777 = vmatpush.bf16.msra.mxu1 %v723_v31 }
  0x26   : > { %778 = vmatpush.bf16.msra.mxu2 %v723_v31  ;;  %779 = vmatpush.bf16.msra.mxu3 %v723_v31 }
  0x27   : > { %515 = vperm.xlu0 %792, %v464_v54  }
  0x28   : > { %520 = vperm.xlu1 %793, %v465_v55  }
  0x29   : > { %419 = vmatpush.bf16.msra.mxu0 %v722_v43  ;;  %780 = vmatpush.bf16.msra.mxu1 %v722_v43 }
  0x2a   : > { %781 = vmatpush.bf16.msra.mxu2 %v722_v43  ;;  %782 = vmatpush.bf16.msra.mxu3 %v722_v43 }
  0x2b   : > { %525 = vperm.xlu2 %794, %v466_v6  }
  0x2c   : > { %420 = vmatmul.bf16.vlgmr.msra.gmra.mxu0 %v341_v47  ;;  %425 = vmatmul.bf16.vlgmr.msra.gmra.mxu1 %v342_v48 }
  0x2d   : > { %435 = vmatmul.bf16.vlgmr.msra.gmra.mxu2 %v344_v49  ;;  %445 = vmatmul.bf16.vlgmr.msra.gmra.mxu3 %v346_v50 }
  0x2f   : > { %530 = vperm.xlu0 %792, %v467_v3  }
  0x3c   : > { %430 = vmatmul.bf16.gmra.mxu1 %v343_v10 }
  0x3d   : > { %440 = vmatmul.bf16.gmra.mxu2 %v345_v11  ;;  %450 = vmatmul.bf16.gmra.mxu3 %v347_v12 }
  0x6d   : > { %v491_v17 = vpop.permute.xlu2 %490 }
  0x75   : > { %v496_v27 = vpop.permute.xlu2 %495 }
  0x7d   : > { %v511_v47 = vpop.permute.xlu2 %510 }
  0x81   : > { %v471_v13 = vpop.permute.xlu0 %470 }
  0x82   : > { %v481_v14 = vpop.permute.xlu1 %480 }
  0x85   : > { %v526_v9 = vpop.permute.xlu2 %525 }
  0x89   : > { %v476_v18 = vpop.permute.xlu0 %475 }
  0x8a   : > { %v486_v24 = vpop.permute.xlu1 %485 }
  0x91   : > { %v501_v33 = vpop.permute.xlu0 %500 }
  0x92   : > { %v506_v40 = vpop.permute.xlu1 %505 }
  0x99   : > { %v516_v53 = vpop.permute.xlu0 %515 }
  0x9a   : > { %v521_v62 = vpop.permute.xlu1 %520 }
  0xa9   : > { %v421_v15 = vpop.f32.mrf.mxu0  ;;  %v426_v16 = vpop.f32.mrf.mxu1 }
  0xaa   : > { %v533_v25 = vmul.f32 %v471_v13, %v421_v15  ;;  %v535_v29 = vmul.f32 %v481_v14, %v426_v16  ;;  %v531_v14 = vpop.permute.xlu0 %530 }
  0xac   : > { %v565_v28 = vmul.f32 %v533_v25, %v421_v15  ;;  %v567_v36 = vmul.f32 %v535_v29, %v426_v16 }
  0xb0   : > { %v436_v19 = vpop.f32.mrf.mxu2  ;;  %v446_v20 = vpop.f32.mrf.mxu3 }
  0xb1   : > { %v423_v21 = vpop.f32.mrf.mxu0  ;;  %v428_v22 = vpop.f32.mrf.mxu1  ;;  %v539_v49 = vmul.f32 %v501_v33, %v436_v19  ;;  %v543_v5 = vmul.f32 %v521_v62, %v446_v20 }
  0xb2   : > { %v534_v23 = vmul.f32 %v476_v18, %v423_v21  ;;  %v536_v38 = vmul.f32 %v486_v24, %v428_v22 }
  0xb3   : > { %v571_v58 = vmul.f32 %v539_v49, %v436_v19  ;;  %v575_v15 = vmul.f32 %v543_v5, %v446_v20 }
  0xb4   : > { %v566_v26 = vmul.f32 %v534_v23, %v423_v21  ;;  %v546_v30 = vadd.f32 %v534_v23, %v533_v25  ;;  %v568_v43 = vmul.f32 %v536_v38, %v428_v22 }
  0xb6   : > { %v578_v35 = vadd.f32 %v566_v26, %v565_v28  ;;  %v547_v37 = vadd.f32 %v546_v30, %v535_v29 }
  0xb8   : > { %v438_v31 = vpop.f32.mrf.mxu2  ;;  %v448_v32 = vpop.f32.mrf.mxu3  ;;  %v579_v41 = vadd.f32 %v578_v35, %v567_v36  ;;  %v548_v42 = vadd.f32 %v547_v37, %v536_v38 }
  0xb9   : > { %v431_v34 = vpop.f32.mrf.mxu1  ;;  %v540_v54 = vmul.f32 %v506_v40, %v438_v31  ;;  %v544_v10 = vmul.f32 %v526_v9, %v448_v32 }
  0xba   : > { %v537_v39 = vmul.f32 %v491_v17, %v431_v34  ;;  %v580_v50 = vadd.f32 %v579_v41, %v568_v43 }
  0xbb   : > { %v572_v63 = vmul.f32 %v540_v54, %v438_v31  ;;  %v576_v19 = vmul.f32 %v544_v10, %v448_v32 }
  0xbc   : > { %v569_v44 = vmul.f32 %v537_v39, %v431_v34  ;;  %v549_v51 = vadd.f32 %v548_v42, %v537_v39 }
  0xbe   : > { %v581_v55 = vadd.f32 %v580_v50, %v569_v44 }
  0xc0   : > { %v441_v45 = vpop.f32.mrf.mxu2  ;;  %v451_v46 = vpop.f32.mrf.mxu3 }
  0xc1   : > { %v433_v48 = vpop.f32.mrf.mxu1  ;;  %v541_v59 = vmul.f32 %v511_v47, %v441_v45  ;;  %v545_v16 = vmul.f32 %v531_v14, %v451_v46 }
  0xc2   : > { %v538_v52 = vmul.f32 %v496_v27, %v433_v48 }
  0xc3   : > { %v573_v6 = vmul.f32 %v541_v59, %v441_v45  ;;  %v577_v23 = vmul.f32 %v545_v16, %v451_v46 }
  0xc4   : > { %v550_v56 = vadd.f32 %v549_v51, %v538_v52  ;;  %v570_v57 = vmul.f32 %v538_v52, %v433_v48 }
  0xc6   : > { %v551_v60 = vadd.f32 %v550_v56, %v539_v49  ;;  %v582_v61 = vadd.f32 %v581_v55, %v570_v57 }
  0xc8   : > { %v583_v0 = vadd.f32 %v582_v61, %v571_v58  ;;  %v443_v1 = vpop.f32.mrf.mxu2  ;;  %v552_v2 = vadd.f32 %v551_v60, %v540_v54  ;;  %v453_v3 = vpop.f32.mrf.mxu3 }
  0xc9   : > { %v542_v4 = vmul.f32 %v516_v53, %v443_v1 }
  0xca   : > { %v553_v7 = vadd.f32 %v552_v2, %v541_v59  ;;  %v584_v8 = vadd.f32 %v583_v0, %v572_v63 }
  0xcb   : > { %v574_v12 = vmul.f32 %v542_v4, %v443_v1 }
  0xcc   : > { %v554_v11 = vadd.f32 %v553_v7, %v542_v4  ;;  %v585_v13 = vadd.f32 %v584_v8, %v573_v6 }
  0xce   : > { %v555_v17 = vadd.f32 %v554_v11, %v543_v5  ;;  %v586_v18 = vadd.f32 %v585_v13, %v574_v12 }
  0xd0   : > { %v556_v21 = vadd.f32 %v555_v17, %v544_v10  ;;  %v587_v22 = vadd.f32 %v586_v18, %v575_v15 }
  0xd2   : > { %v557_v24 = vadd.f32 %v556_v21, %v545_v16  ;;  %v588_v25 = vadd.f32 %v587_v22, %v576_v19 }
  0xd4   : > { %v558_v26 = vrot.slane %v557_v24, 4  ;;  %v589_v27 = vadd.f32 %v588_v25, %v577_v23 }
  0xd6   : > { %v559_v28 = vadd.f32 %v558_v26, %v557_v24  ;;  %v590_v29 = vrot.slane %v589_v27, 4 }
  0xd8   : > { %v560_v30 = vrot.slane %v559_v28, 2  ;;  %v591_v31 = vadd.f32 %v590_v29, %v589_v27 }
  0xda   : > { %v561_v33 = vadd.f32 %v560_v30, %v559_v28  ;;  %v592_v20 = vrot.slane %v591_v31, 2 }
  0xdc   : > { %v562_v34 = vrot.slane %v561_v33, 1  ;;  %v593_v35 = vadd.f32 %v592_v20, %v591_v31 }
  0xde   : > { %v563_v32 = vadd.f32 %v562_v34, %v561_v33  ;;  %v594_v36 = vrot.slane %v593_v35, 1 }
  0xe0   : > { %564 = vst [vmem:[%s277_s8] sm:$0x1] %v563_v32  ;;  %v595_v37 = vadd.f32 %v594_v36, %v593_v35 }
  0xe2   : > { %596 = vst [vmem:[%s280_s11] sm:$0x1] %v595_v37 }
  0xe3 PF: > { %s17_s21 = sadd.s32 1, %s803_s21  }
  0xe4   : > { %p14_p5 = scmp.ge.s32.totalorder %s17_s21, 4  }
  0xe6   :  { %16 = sbr.rel (!%p14_p5) target bundleno = 1 (0x1), region = 85 }

// kernel: bottleneck_forward.5
= control target key start
LH: loop header
LB: loop body
LE: loop exit
PB: predicated region body
PF: predicated region fallthrough
CT: control target
= control target key end

     0   :  { %s824_s24 = smov 0   ;;  %s966_s0 = inlined_call_operand.vmem [shape: bf16[208,128], index: 0, kind: input, shape index: {}]   ;;  %s967_s1 = inlined_call_operand.vmem [shape: bf16[208,128], index: 1, kind: input, shape index: {}]   ;;  %s968_s2 = inlined_call_operand.vmem [shape: f32[1,128], index: 2, kind: input, shape index: {}]   ;;  %s969_s3 = inlined_call_operand.vmem [shape: f32[1,128], index: 3, kind: input, shape index: {}]   ;;  %s970_s4 = inlined_call_operand.vmem [shape: f32[1,128], index: 4, kind: input, shape index: {}]   ;;  %s971_s5 = inlined_call_operand.vmem [shape: f32[1,128], index: 5, kind: input, shape index: {}]   ;;  %s972_s6 = inlined_call_operand.vmem [shape: bf16[128,128], index: 6, kind: input, shape index: {}]   ;;  %s973_s7 = inlined_call_operand.vmem [shape: f32[208,128], index: 7, kind: output, shape index: {}]  }
   0x1 LB: > { %s632_s25 = sadd.s32 4294967295, %s782_s24   ;;  %p636_p0 = scmp.ge.s32.totalorder %s782_s24, 1  ;;  %s782_s24 = sphi %s824_s24, %s17_s24  }
   0x2   : > { %p249_p1 = scmp.lt.s32.totalorder %s782_s24, 3 }
   0x4   : > { %p250_p2 = pnand %p636_p0, %p249_p1 }
   0x5   : > { %s286_s28 = smul.u32 (!%p250_p2), 13, %s632_s25 }
   0x6   : > { %253 = sbr.rel (%p250_p2) target bundleno = 206 (0xce), region = 48 }
   0x7   : > { %p287_p3 = scmp.lt.s32.totalorder (!%p250_p2), %s286_s28, 25 }
   0xb   : > { %v681_v0 = vld [vmem:[%s972_s6 + $0x38] sm:$0xff]  ;;  %v680_v1 = vld [vmem:[%s972_s6 + $0x30] sm:$0xff]  ;;  %s975_s28 = smov (!%p287_p3, %s286_s28), 25  ;;  %v679_v2 = vld [vmem:[%s972_s6 + $0x28] sm:$0xff] }
   0xc   : > { %740 = vmatpush.bf16.msra.mxu1 %v681_v0  ;;  %741 = vmatpush.bf16.msra.mxu2 %v681_v0  ;;  %s637_s10 = sshll.u32 %s975_s28, 2  ;;  %v678_v3 = vld [vmem:[%s972_s6 + $0x20] sm:$0xff]  ;;  %v677_v5 = vld [vmem:[%s972_s6 + $0x18] sm:$0xff]  ;;  %v676_v15 = vld [vmem:[%s972_s6 + $0x10] sm:$0xff] }
   0xd   : > { %742 = vmatpush.bf16.msra.mxu3 %v681_v0  ;;  %435 = vmatpush.bf16.msra.mxu0 %v681_v0  ;;  %s852_s15 = scalar_lea.vmem %s966_s0, %s637_s10  ;;  %v864_v10 = vld [vmem:[%s968_s2] ss:$0 sm:$0xff]  ;;  %v675_v25 = vld [vmem:[%s972_s6 + $0x8] sm:$0xff]  ;;  %s899_s9 = scalar_lea.vmem %s967_s1, %s637_s10 }
   0xe   : > { %v730_v4 = vld [vmem:[%s852_s15 + $0x8] sm:$0xff]   ;;  %v732_v6 = vld [vmem:[%s852_s15 + $0x18] sm:$0xff]   ;;  %v683_v8 = vld [vmem:[%s852_s15] sm:$0xff]  }
   0xf   : > { %v734_v7 = vld [vmem:[%s852_s15 + $0x28] sm:$0xff]   ;;  %v688_v9 = vunpack.c.l.bf16 %v730_v4  ;;  %v689_v11 = vunpack.c.h.bf16 %v730_v4  ;;  %v696_v12 = vunpack.c.l.bf16 %v732_v6  ;;  %v697_v13 = vunpack.c.h.bf16 %v732_v6  ;;  %v773_v20 = vld [vmem:[%s969_s3] ss:$0 sm:$0xff]  ;;  %v731_v42 = vld [vmem:[%s852_s15 + $0x10] sm:$0xff]  }
  0x10   : > { %743 = vmatpush.bf16.msra.mxu1 %v680_v1  ;;  %744 = vmatpush.bf16.msra.mxu2 %v680_v1  ;;  %v704_v14 = vunpack.c.l.bf16 %v734_v7  ;;  %v705_v16 = vunpack.c.h.bf16 %v734_v7  ;;  %v684_v17 = vunpack.c.l.bf16 %v683_v8  ;;  %v685_v18 = vunpack.c.h.bf16 %v683_v8  ;;  %v674_v34 = vld [vmem:[%s972_s6] sm:$0xff]  ;;  %v316_v44 = vld [vmem:[%s852_s15 + $0x30] sm:$0xf]  ;;  %v735_v0 = vld [vmem:[%s899_s9 + $0x8] sm:$0xff]  }
  0x11   : > { %745 = vmatpush.bf16.msra.mxu3 %v680_v1  ;;  %436 = vmatpush.bf16.msra.mxu0 %v680_v1  ;;  %v336_v19 = vmul.f32 %v864_v10, %v688_v9  ;;  %v337_v21 = vmul.f32 %v864_v10, %v689_v11  ;;  %v340_v22 = vmul.f32 %v864_v10, %v696_v12  ;;  %v733_v43 = vld [vmem:[%s852_s15 + $0x20] sm:$0xff]   ;;  %v692_v45 = vunpack.c.l.bf16 %v731_v42  ;;  %s639_s15 = sshll.u32 %s975_s28, 3 }
  0x12   : > { %v341_v23 = vmul.f32 %v864_v10, %v697_v13  ;;  %v344_v24 = vmul.f32 %v864_v10, %v704_v14  ;;  %v345_v26 = vmul.f32 %v864_v10, %v705_v16  ;;  %v334_v27 = vmul.f32 %v864_v10, %v684_v17  ;;  %v904_v63 = vld [vmem:[%s970_s4] ss:$0 sm:$0xff]  ;;  %s920_s17 = scalar_lea.vmem %s973_s7, %s639_s15  ;;  %v739_v13 = vld [vmem:[%s899_s9 + $0x28] sm:$0xff]  }
  0x13   : > { %v335_v28 = vmul.f32 %v864_v10, %v685_v18  ;;  %v353_v29 = vadd.f32 %v773_v20, %v336_v19  ;;  %v354_v30 = vadd.f32 %v773_v20, %v337_v21  ;;  %v357_v31 = vadd.f32 %v773_v20, %v340_v22  ;;  %v910_v1 = vld [vmem:[%s971_s5] ss:$0 sm:$0xff] }
  0x14   : > { %746 = vmatpush.bf16.msra.mxu1 %v679_v2  ;;  %747 = vmatpush.bf16.msra.mxu2 %v679_v2  ;;  %v358_v32 = vadd.f32 %v773_v20, %v341_v23  ;;  %v361_v33 = vadd.f32 %v773_v20, %v344_v24  ;;  %v362_v35 = vadd.f32 %v773_v20, %v345_v26  ;;  %v693_v46 = vunpack.c.h.bf16 %v731_v42 }
  0x15   : > { %748 = vmatpush.bf16.msra.mxu3 %v679_v2  ;;  %437 = vmatpush.bf16.msra.mxu0 %v679_v2  ;;  %v351_v36 = vadd.f32 %v773_v20, %v334_v27  ;;  %v352_v37 = vadd.f32 %v773_v20, %v335_v28  ;;  %v365_v38 = vpack.c.bf16 %v354_v30, %v353_v29  ;;  %v700_v47 = vunpack.c.l.bf16 %v733_v43  ;;  %v707_v2 = vld [vmem:[%s899_s9] sm:$0xff]  }
  0x16   : > { %v367_v39 = vpack.c.bf16 %v358_v32, %v357_v31  ;;  %v369_v40 = vpack.c.bf16 %v362_v35, %v361_v33  ;;  %v701_v48 = vunpack.c.h.bf16 %v733_v43  ;;  %v329_v49 = vunpack.c.l.bf16 %v316_v44  ;;  %v736_v35 = vld [vmem:[%s899_s9 + $0x10] sm:$0xff]  }
  0x17   : > { %v364_v41 = vpack.c.bf16 %v352_v37, %v351_v36  ;;  %v338_v50 = vmul.f32 %v864_v10, %v692_v45  ;;  %v339_v51 = vmul.f32 %v864_v10, %v693_v46  ;;  %v342_v52 = vmul.f32 %v864_v10, %v700_v47 }
  0x18   : > { %749 = vmatpush.bf16.msra.mxu1 %v678_v3  ;;  %750 = vmatpush.bf16.msra.mxu2 %v678_v3  ;;  %v343_v53 = vmul.f32 %v864_v10, %v701_v48  ;;  %v346_v54 = vmul.f32 %v864_v10, %v329_v49  ;;  %v708_v8 = vunpack.c.l.bf16 %v707_v2  ;;  %v737_v10 = vld [vmem:[%s899_s9 + $0x18] sm:$0xff]   ;;  %v713_v24 = vunpack.c.h.bf16 %v735_v0 }
  0x19   : > { %751 = vmatpush.bf16.msra.mxu3 %v678_v3  ;;  %438 = vmatpush.bf16.msra.mxu0 %v678_v3  ;;  %v355_v55 = vadd.f32 %v773_v20, %v338_v50  ;;  %v356_v56 = vadd.f32 %v773_v20, %v339_v51  ;;  %v359_v57 = vadd.f32 %v773_v20, %v342_v52  ;;  %v720_v17 = vunpack.c.l.bf16 %v737_v10  ;;  %v738_v50 = vld [vmem:[%s899_s9 + $0x20] sm:$0xff]   ;;  %v524_v52 = vld [vmem:[%s899_s9 + $0x30] sm:$0xf] }
  0x1a   : > { %v360_v58 = vadd.f32 %v773_v20, %v343_v53  ;;  %v363_v59 = vadd.f32 %v773_v20, %v346_v54  ;;  %v728_v20 = vunpack.c.l.bf16 %v739_v13  ;;  %v709_v28 = vunpack.c.h.bf16 %v707_v2 }
  0x1b   : > { %v366_v60 = vpack.c.bf16 %v356_v56, %v355_v55  ;;  %v716_v45 = vunpack.c.l.bf16 %v736_v35  ;;  %v724_v55 = vunpack.c.l.bf16 %v738_v50 }
  0x1c   : > { %752 = vmatpush.bf16.msra.mxu1 %v677_v5  ;;  %753 = vmatpush.bf16.msra.mxu2 %v677_v5  ;;  %v368_v61 = vpack.c.bf16 %v360_v58, %v359_v57  ;;  %v370_v62 = vpack.c.bf16 %v363_v59, %v363_v59  ;;  %v537_v58 = vunpack.c.l.bf16 %v524_v52 }
  0x1d   : > { %754 = vmatpush.bf16.msra.mxu3 %v677_v5  ;;  %439 = vmatpush.bf16.msra.mxu0 %v677_v5  ;;  %v712_v5 = vunpack.c.l.bf16 %v735_v0 }
  0x20   : > { %755 = vmatpush.bf16.msra.mxu1 %v676_v15  ;;  %756 = vmatpush.bf16.msra.mxu2 %v676_v15 }
  0x21   : > { %757 = vmatpush.bf16.msra.mxu3 %v676_v15  ;;  %440 = vmatpush.bf16.msra.mxu0 %v676_v15 }
  0x24   : > { %758 = vmatpush.bf16.msra.mxu1 %v675_v25  ;;  %759 = vmatpush.bf16.msra.mxu2 %v675_v25 }
  0x25   : > { %760 = vmatpush.bf16.msra.mxu3 %v675_v25  ;;  %441 = vmatpush.bf16.msra.mxu0 %v675_v25 }
  0x28   : > { %761 = vmatpush.bf16.msra.mxu1 %v674_v34  ;;  %762 = vmatpush.bf16.msra.mxu2 %v674_v34 }
  0x29   : > { %763 = vmatpush.bf16.msra.mxu3 %v674_v34  ;;  %442 = vmatpush.bf16.msra.mxu0 %v674_v34 }
  0x2b   : > { %448 = vmatmul.bf16.vlgmr.msra.gmra.mxu1 %v365_v38  ;;  %458 = vmatmul.bf16.vlgmr.msra.gmra.mxu2 %v367_v39  ;;  %v721_v38 = vunpack.c.h.bf16 %v737_v10 }
  0x2c   : > { %468 = vmatmul.bf16.vlgmr.msra.gmra.mxu3 %v369_v40  ;;  %443 = vmatmul.bf16.vlgmr.msra.gmra.mxu0 %v364_v41  ;;  %v729_v41 = vunpack.c.h.bf16 %v739_v13 }
  0x3b   : > { %453 = vmatmul.bf16.gmra.mxu1 %v366_v60  ;;  %463 = vmatmul.bf16.gmra.mxu2 %v368_v61 }
  0x3c   : > { %473 = vmatmul.bf16.gmra.mxu3 %v370_v62  ;;  %v717_v62 = vunpack.c.h.bf16 %v736_v35 }
  0xa8   : > { %v449_v3 = vpop.f32.mrf.mxu1 }
  0xa9   : > { %v484_v4 = vmul.f32 %v904_v63, %v449_v3  ;;  %v444_v6 = vpop.f32.mrf.mxu0 }
  0xaa   : > { %v482_v7 = vmul.f32 %v904_v63, %v444_v6 }
  0xab   : > { %v501_v9 = vadd.f32 %v910_v1, %v484_v4 }
  0xac   : > { %v499_v11 = vadd.f32 %v910_v1, %v482_v7 }
  0xad   : > { %v540_v12 = vadd.f32 %v712_v5, %v501_v9 }
  0xae   : > { %v459_v14 = vpop.f32.mrf.mxu2  ;;  %v538_v15 = vadd.f32 %v708_v8, %v499_v11  ;;  %v725_v8 = vunpack.c.h.bf16 %v738_v50 }
  0xaf   : > { %553 = vst [vmem:[%s920_s17 + $0x10] sm:$0xff] %v540_v12  ;;  %v488_v16 = vmul.f32 %v904_v63, %v459_v14  ;;  %v469_v18 = vpop.f32.mrf.mxu3 }
  0xb0   : > { %v492_v19 = vmul.f32 %v904_v63, %v469_v18  ;;  %v451_v21 = vpop.f32.mrf.mxu1  ;;  %551 = vst [vmem:[%s920_s17] sm:$0xff] %v538_v15 }
  0xb1   : > { %v505_v22 = vadd.f32 %v910_v1, %v488_v16  ;;  %v485_v23 = vmul.f32 %v904_v63, %v451_v21  ;;  %v446_v25 = vpop.f32.mrf.mxu0 }
  0xb2   : > { %v509_v26 = vadd.f32 %v910_v1, %v492_v19  ;;  %v483_v27 = vmul.f32 %v904_v63, %v446_v25 }
  0xb3   : > { %v544_v29 = vadd.f32 %v720_v17, %v505_v22  ;;  %v502_v30 = vadd.f32 %v910_v1, %v485_v23 }
  0xb4   : > { %v548_v31 = vadd.f32 %v728_v20, %v509_v26  ;;  %v500_v32 = vadd.f32 %v910_v1, %v483_v27 }
  0xb5   : > { %557 = vst [vmem:[%s920_s17 + $0x30] sm:$0xff] %v544_v29  ;;  %v541_v33 = vadd.f32 %v713_v24, %v502_v30 }
  0xb6   : > { %561 = vst [vmem:[%s920_s17 + $0x50] sm:$0xff] %v548_v31  ;;  %v461_v34 = vpop.f32.mrf.mxu2  ;;  %v539_v36 = vadd.f32 %v709_v28, %v500_v32 }
  0xb7   : > { %554 = vst [vmem:[%s920_s17 + $0x18] sm:$0xff] %v541_v33  ;;  %v489_v37 = vmul.f32 %v904_v63, %v461_v34  ;;  %v471_v39 = vpop.f32.mrf.mxu3 }
  0xb8   : > { %v493_v40 = vmul.f32 %v904_v63, %v471_v39  ;;  %v454_v42 = vpop.f32.mrf.mxu1  ;;  %552 = vst [vmem:[%s920_s17 + $0x8] sm:$0xff] %v539_v36 }
  0xb9   : > { %v506_v43 = vadd.f32 %v910_v1, %v489_v37  ;;  %v486_v44 = vmul.f32 %v904_v63, %v454_v42 }
  0xba   : > { %v510_v46 = vadd.f32 %v910_v1, %v493_v40 }
  0xbb   : > { %v545_v47 = vadd.f32 %v721_v38, %v506_v43  ;;  %v503_v48 = vadd.f32 %v910_v1, %v486_v44 }
  0xbc   : > { %v549_v49 = vadd.f32 %v729_v41, %v510_v46 }
  0xbd   : > { %558 = vst [vmem:[%s920_s17 + $0x38] sm:$0xff] %v545_v47  ;;  %v542_v51 = vadd.f32 %v716_v45, %v503_v48 }
  0xbe   : > { %562 = vst [vmem:[%s920_s17 + $0x58] sm:$0xff] %v549_v49  ;;  %v464_v53 = vpop.f32.mrf.mxu2 }
  0xbf   : > { %555 = vst [vmem:[%s920_s17 + $0x20] sm:$0xff] %v542_v51  ;;  %v490_v54 = vmul.f32 %v904_v63, %v464_v53  ;;  %v474_v56 = vpop.f32.mrf.mxu3 }
  0xc0   : > { %v494_v57 = vmul.f32 %v904_v63, %v474_v56  ;;  %v456_v59 = vpop.f32.mrf.mxu1 }
  0xc1   : > { %v507_v60 = vadd.f32 %v910_v1, %v490_v54  ;;  %v487_v61 = vmul.f32 %v904_v63, %v456_v59 }
  0xc2   : > { %v511_v0 = vadd.f32 %v910_v1, %v494_v57 }
  0xc3   : > { %v546_v2 = vadd.f32 %v724_v55, %v507_v60  ;;  %v504_v3 = vadd.f32 %v910_v1, %v487_v61 }
  0xc4   : > { %v550_v4 = vadd.f32 %v537_v58, %v511_v0 }
  0xc5   : > { %559 = vst [vmem:[%s920_s17 + $0x40] sm:$0xff] %v546_v2  ;;  %v543_v5 = vadd.f32 %v717_v62, %v504_v3 }
  0xc6   : > { %563 = vst [vmem:[%s920_s17 + $0x60] sm:$0xff] %v550_v4  ;;  %v466_v6 = vpop.f32.mrf.mxu2 }
  0xc7   : > { %556 = vst [vmem:[%s920_s17 + $0x28] sm:$0xff] %v543_v5  ;;  %v491_v7 = vmul.f32 %v904_v63, %v466_v6  ;;  %v476_v9 = vpop.f32.mrf.mxu3 }
  0xc9   : > { %v508_v10 = vadd.f32 %v910_v1, %v491_v7 }
  0xcb   : > { %v547_v11 = vadd.f32 %v725_v8, %v508_v10 }
  0xcd   : > { %560 = vst [vmem:[%s920_s17 + $0x48] sm:$0xff] %v547_v11 }
  0xce PF: > { %s17_s24 = sadd.s32 1, %s782_s24  }
  0xcf   : > { %p14_p4 = scmp.ge.s32.totalorder %s17_s24, 4  }
  0xd1   :  { %16 = sbr.rel (!%p14_p4) target bundleno = 1 (0x1), region = 81 }

// kernel: bottleneck_forward.3
= control target key start
LH: loop header
LB: loop body
LE: loop exit
PB: predicated region body
PF: predicated region fallthrough
CT: control target
= control target key end

     0   :  { %s2671_s21 = smov 0   ;;  %s3497_s0 = inlined_call_operand.vmem [shape: bf16[2,104,128], index: 0, kind: input, shape index: {}]   ;;  %s3498_s1 = inlined_call_operand.vmem [shape: bf16[128,128], index: 1, kind: input, shape index: {}]   ;;  %s3499_s2 = inlined_call_operand.vmem [shape: bf16[3,384,128], index: 2, kind: input, shape index: {}]   ;;  %s3500_s3 = inlined_call_operand.vmem [shape: f32[104,1], index: 3, kind: input, shape index: {}]   ;;  %s3501_s4 = inlined_call_operand.vmem [shape: bf16[2,104,128], index: 4, kind: output, shape index: {0}]   ;;  %s3502_s5 = inlined_call_operand.vmem [shape: f32[2,1,128], index: 5, kind: output, shape index: {1}]   ;;  %s3503_s6 = inlined_call_operand.vmem [shape: f32[2,1,128], index: 6, kind: output, shape index: {2}]  }
   0x1 LB: > { %s2028_s22 = sadd.s32 4294967295, %s2633_s21   ;;  %p2032_p0 = scmp.ge.s32.totalorder %s2633_s21, 1  ;;  %s2633_s21 = sphi %s2671_s21, %s17_s21  }
   0x2   : > { %p217_p1 = scmp.lt.s32.totalorder %s2633_s21, 3 }
   0x4   : > { %p218_p2 = pnand %p2032_p0, %p217_p1 }
   0x5   : > { %p253_p3 = scmp.lt.s32.totalorder (!%p218_p2), %s2028_s22, 1 }
   0x6   : > { %221 = sbr.rel (%p218_p2) target bundleno = 654 (0x28e), region = 36 }
   0xb   : > { %v2490_v0 = vld [vmem:[%s3498_s1 + $0x38] sm:$0xff]  ;;  %v2489_v1 = vld [vmem:[%s3498_s1 + $0x30] sm:$0xff]  ;;  %v2488_v2 = vld [vmem:[%s3498_s1 + $0x28] sm:$0xff]  ;;  %s3505_s22 = smov (!%p253_p3, %s2028_s22), 1  ;;  %vm476_vm0 = vsmask.f32 5376 }
   0xc   : > { %387 = vmatpush.bf16.msra.mxu0 %v2490_v0  ;;  %2598 = vmatpush.bf16.msra.mxu2 %v2490_v0  ;;  %v2487_v3 = vld [vmem:[%s3498_s1 + $0x20] sm:$0xff]  ;;  %v2486_v4 = vld [vmem:[%s3498_s1 + $0x18] sm:$0xff]  ;;  %v2485_v5 = vld [vmem:[%s3498_s1 + $0x10] sm:$0xff]  ;;  %s2614_s13 = smul.u32 52, %s3505_s22  ;;  %vm547_vm1 = vcmask 1045504   ;;  %vm747_vm3 = vcmask 1042432   ;;  %s265_s27 = scalar_lea.vmem %s3502_s5, %s3505_s22 }
   0xd   : > { %v2484_v6 = vld [vmem:[%s3498_s1 + $0x8] sm:$0xff]  ;;  %v2483_v7 = vld [vmem:[%s3498_s1] sm:$0xff]  ;;  %v2498_v12 = vld [vmem:[%s3499_s2 + $0x38] sm:$0xff]  ;;  %vm618_vm4 = vcmask 1046528   ;;  %vm550_vm5 = vcmask 1041408   ;;  %s268_s30 = scalar_lea.vmem %s3503_s6, %s3505_s22 }
   0xe   : > { %s257_s18 = scalar_lea.vmem %s3497_s0, %s2614_s13  ;;  %v2497_v13 = vld [vmem:[%s3499_s2 + $0x30] sm:$0xff]  ;;  %v2496_v15 = vld [vmem:[%s3499_s2 + $0x28] sm:$0xff]  ;;  %v2495_v20 = vld [vmem:[%s3499_s2 + $0x20] sm:$0xff]  ;;  %vm551_vm6 = vsmask.f32 1280  ;;  %s3443_s25 = scalar_lea.vmem %s3501_s4, %s2614_s13 }
   0xf   : > { %v2477_v8 = vld [vmem:[%s257_s18] sm:$0xff]  ;;  %v2478_v10 = vld [vmem:[%s257_s18 + $0x8] sm:$0xff]  ;;  %v282_v14 = vld [vmem:[%s257_s18 + $0x30] sm:$0xf]  ;;  %vm554_vm8 = vsmask.f32 7424 }
  0x10   : > { %388 = vmatpush.bf16.msra.mxu0 %v2489_v1  ;;  %2599 = vmatpush.bf16.msra.mxu2 %v2489_v1  ;;  %v2481_v9 = vld [vmem:[%s257_s18 + $0x20] sm:$0xff]  ;;  %v2482_v11 = vld [vmem:[%s257_s18 + $0x28] sm:$0xff]  ;;  %v324_v16 = vunpack.c.l.b16 %v282_v14  ;;  %v2479_v17 = vld [vmem:[%s257_s18 + $0x10] sm:$0xff] }
  0x11   : > { %v2480_v19 = vld [vmem:[%s257_s18 + $0x18] sm:$0xff]  ;;  %v2493_v23 = vld [vmem:[%s3499_s2 + $0x10] sm:$0xff]  ;;  %v2492_v25 = vld [vmem:[%s3499_s2 + $0x8] sm:$0xff] }
  0x12   : > { %v331_v18 = vpack.c.b16 %v324_v16, %v324_v16  ;;  %v2494_v21 = vld [vmem:[%s3499_s2 + $0x18] sm:$0xff]  ;;  %v2521_v24 = vld [vmem:[%s3499_s2 + $0xf0] sm:$0xff]  ;;  %v2520_v26 = vld [vmem:[%s3499_s2 + $0xe8] sm:$0xff] }
  0x13   : > { %v2522_v22 = vld [vmem:[%s3499_s2 + $0xf8] sm:$0xff]  ;;  %v2491_v27 = vld [vmem:[%s3499_s2] sm:$0xff]  ;;  %v2517_v30 = vld [vmem:[%s3499_s2 + $0xd0] sm:$0xff] }
  0x14   : > { %389 = vmatpush.bf16.msra.mxu0 %v2488_v2  ;;  %2600 = vmatpush.bf16.msra.mxu2 %v2488_v2  ;;  %v2519_v28 = vld [vmem:[%s3499_s2 + $0xe0] sm:$0xff]  ;;  %v2518_v29 = vld [vmem:[%s3499_s2 + $0xd8] sm:$0xff]  ;;  %v2516_v33 = vld [vmem:[%s3499_s2 + $0xc8] sm:$0xff] }
  0x15   : > { %958 = vmatpush.bf16.msra.mxu1 %v2522_v22  ;;  %2606 = vmatpush.bf16.msra.mxu3 %v2522_v22  ;;  %v2530_v31 = vld [vmem:[%s3499_s2 + $0x138] sm:$0xff]  ;;  %v2529_v34 = vld [vmem:[%s3499_s2 + $0x130] sm:$0xff]  ;;  %v2515_v35 = vld [vmem:[%s3499_s2 + $0xc0] sm:$0xff] }
  0x16   : > { %v2528_v36 = vld [vmem:[%s3499_s2 + $0x128] sm:$0xff]  ;;  %v2527_v41 = vld [vmem:[%s3499_s2 + $0x120] sm:$0xff]  ;;  %v2526_v45 = vld [vmem:[%s3499_s2 + $0x118] sm:$0xff] }
  0x17   : > { %v2525_v52 = vld [vmem:[%s3499_s2 + $0x110] sm:$0xff]  ;;  %vm548_vm2 = vmand %vm547_vm1, %vm476_vm0  ;;  %v2524_v57 = vld [vmem:[%s3499_s2 + $0x108] sm:$0xff] }
  0x18   : > { %390 = vmatpush.bf16.msra.mxu0 %v2487_v3  ;;  %2601 = vmatpush.bf16.msra.mxu2 %v2487_v3  ;;  %v2523_v0 = vld [vmem:[%s3499_s2 + $0x100] sm:$0xff]  ;;  %vm552_vm7 = vmand %vm550_vm5, %vm551_vm6 }
  0x19   : > { %959 = vmatpush.bf16.msra.mxu1 %v2521_v24  ;;  %2607 = vmatpush.bf16.msra.mxu3 %v2521_v24 }
  0x1c   : > { %391 = vmatpush.bf16.msra.mxu0 %v2486_v4  ;;  %2602 = vmatpush.bf16.msra.mxu2 %v2486_v4 }
  0x1d   : > { %960 = vmatpush.bf16.msra.mxu1 %v2520_v26  ;;  %2608 = vmatpush.bf16.msra.mxu3 %v2520_v26 }
  0x20   : > { %392 = vmatpush.bf16.msra.mxu0 %v2485_v5  ;;  %2603 = vmatpush.bf16.msra.mxu2 %v2485_v5 }
  0x21   : > { %961 = vmatpush.bf16.msra.mxu1 %v2519_v28  ;;  %2609 = vmatpush.bf16.msra.mxu3 %v2519_v28 }
  0x24   : > { %393 = vmatpush.bf16.msra.mxu0 %v2484_v6  ;;  %2604 = vmatpush.bf16.msra.mxu2 %v2484_v6 }
  0x25   : > { %962 = vmatpush.bf16.msra.mxu1 %v2518_v29  ;;  %2610 = vmatpush.bf16.msra.mxu3 %v2518_v29 }
  0x28   : > { %394 = vmatpush.bf16.msra.mxu0 %v2483_v7  ;;  %2605 = vmatpush.bf16.msra.mxu2 %v2483_v7 }
  0x29   : > { %963 = vmatpush.bf16.msra.mxu1 %v2517_v30  ;;  %2611 = vmatpush.bf16.msra.mxu3 %v2517_v30 }
  0x2b   : > { %395 = vmatmul.bf16.vlgmr.msra.gmra.mxu0 %v2477_v8  ;;  %415 = vmatmul.bf16.vlgmr.msra.gmra.mxu2 %v2481_v9 }
  0x2c   : > { %1231 = vmatpush.bf16.msrb.mxu0 %v2498_v12  ;;  %1001 = vmatpush.bf16.msrb.mxu2 %v2530_v31 }
  0x2d   : > { %964 = vmatpush.bf16.msra.mxu1 %v2516_v33  ;;  %2612 = vmatpush.bf16.msra.mxu3 %v2516_v33 }
  0x30   : > { %1232 = vmatpush.bf16.msrb.mxu0 %v2497_v13  ;;  %1002 = vmatpush.bf16.msrb.mxu2 %v2529_v34 }
  0x31   : > { %965 = vmatpush.bf16.msra.mxu1 %v2515_v35  ;;  %2613 = vmatpush.bf16.msra.mxu3 %v2515_v35 }
  0x34   : > { %1233 = vmatpush.bf16.msrb.mxu0 %v2496_v15  ;;  %1003 = vmatpush.bf16.msrb.mxu2 %v2528_v36 }
  0x38   : > { %1234 = vmatpush.bf16.msrb.mxu0 %v2495_v20  ;;  %1004 = vmatpush.bf16.msrb.mxu2 %v2527_v41  ;;  %v2538_v41 = vld [vmem:[%s3499_s2 + $0x178] sm:$0xff] }
  0x39   : > { %1044 = vmatpush.bf16.msrb.mxu3 %v2538_v41 }
  0x3b   : > { %400 = vmatmul.bf16.gmra.mxu0 %v2478_v10  ;;  %420 = vmatmul.bf16.gmra.mxu2 %v2482_v11 }
  0x3c   : > { %1235 = vmatpush.bf16.msrb.mxu0 %v2494_v21  ;;  %1005 = vmatpush.bf16.msrb.mxu2 %v2526_v45 }
  0x40   : > { %1236 = vmatpush.bf16.msrb.mxu0 %v2493_v23  ;;  %1006 = vmatpush.bf16.msrb.mxu2 %v2525_v52 }
  0x44   : > { %1237 = vmatpush.bf16.msrb.mxu0 %v2492_v25  ;;  %1007 = vmatpush.bf16.msrb.mxu2 %v2524_v57  ;;  %v2506_v25 = vld [vmem:[%s3499_s2 + $0x78] sm:$0xff] }
  0x45   : > { %1274 = vmatpush.bf16.msrb.mxu1 %v2506_v25 }
  0x48   : > { %1238 = vmatpush.bf16.msrb.mxu0 %v2491_v27  ;;  %1008 = vmatpush.bf16.msrb.mxu2 %v2523_v0 }
  0x4b   : > { %405 = vmatmul.bf16.gmra.mxu0 %v2479_v17  ;;  %425 = vmatmul.bf16.gmra.mxu2 %v331_v18 }
  0x5b   : > { %410 = vmatmul.bf16.gmra.mxu0 %v2480_v19 }
  0xa8   : > { %v396_v32 = vpop.f32.mrf.mxu0 }
  0xa9   : > { %v430_v38 = vpack.c.bf16 %v396_v32, %v396_v32 }
  0xab   : > { %v456_v42 = vunpack.c.l.b16 %v430_v38 }
  0xae   : > { %v416_v37 = vpop.f32.mrf.mxu2 }
  0xaf   : > { %v438_v53 = vpack.c.bf16 %v416_v37, %v416_v37 }
  0xb0   : > { %v398_v39 = vpop.f32.mrf.mxu0 }
  0xb1   : > { %v431_v40 = vpack.c.bf16 %v398_v39, %v398_v39  ;;  %v464_v58 = vunpack.c.l.b16 %v438_v53 }
  0xb3   : > { %v457_v43 = vunpack.c.l.b16 %v431_v40 }
  0xb5   : > { %v469_v44 = vpack.c.b16 %v457_v43, %v456_v42  ;;  %v2505_v42 = vld [vmem:[%s3499_s2 + $0x70] sm:$0xff] }
  0xb6   : > { %v418_v46 = vpop.f32.mrf.mxu2  ;;  %1275 = vmatpush.bf16.msrb.mxu1 %v2505_v42 }
  0xb7   : > { %v478_v47 = vshrl.u32 %v469_v44, 16  ;;  %v481_v48 = vshll.u32 %v469_v44, 16  ;;  %v439_v54 = vpack.c.bf16 %v418_v46, %v418_v46 }
  0xb8   : > { %v401_v49 = vpop.f32.mrf.mxu0 }
  0xb9   : > { %v480_v50 = vrot.slane %v478_v47, 2  ;;  %v483_v51 = vrot.slane %v481_v48, 3  ;;  %v465_v59 = vunpack.c.l.b16 %v439_v54  ;;  %v432_v61 = vpack.c.bf16 %v401_v49, %v401_v49  ;;  %v2537_v54 = vld [vmem:[%s3499_s2 + $0x170] sm:$0xff] }
  0xba   : > { %1045 = vmatpush.bf16.msrb.mxu3 %v2537_v54 }
  0xbb   : > { %v484_v55 = vor.u32 %v483_v51, %v480_v50  ;;  %v473_v1 = vpack.c.b16 %v465_v59, %v464_v58  ;;  %v458_v2 = vunpack.c.l.b16 %v432_v61 }
  0xbd   : > { %v2779_v56 = vsel %vm548_vm2, 0, %v484_v55  ;;  %v513_v6 = vshrl.u32 %v473_v1, 16  ;;  %v516_v7 = vshll.u32 %v473_v1, 16  ;;  %v2536_v1 = vld [vmem:[%s3499_s2 + $0x168] sm:$0xff] }
  0xbe   : > { %v421_v60 = vpop.f32.mrf.mxu2  ;;  %1239 = vmatmul.bf16.vlgmr.msrb.gmra.mxu0 %v2779_v56  ;;  %v748_v24 = vrot.slane %v2779_v56, 5  ;;  %v619_v29 = vrot.slane %v2779_v56, 1  ;;  %v558_v43 = vshll.u32 %v2779_v56, 16  ;;  %1046 = vmatpush.bf16.msrb.mxu3 %v2536_v1 }
  0xbf   : > { %v440_v3 = vpack.c.bf16 %v421_v60, %v421_v60  ;;  %v515_v17 = vrot.slane %v513_v6, 2  ;;  %v518_v18 = vrot.slane %v516_v7, 3 }
  0xc0   : > { %v403_v62 = vpop.f32.mrf.mxu0  ;;  %v560_v52 = vrot.slane %v558_v43, 1 }
  0xc1   : > { %v433_v63 = vpack.c.bf16 %v403_v62, %v403_v62  ;;  %v466_v9 = vunpack.c.l.b16 %v440_v3  ;;  %v2798_v26 = vor.u32 %v518_v18, %v515_v17  ;;  %v556_v62 = vshrl.u32 %v2779_v56, 16 }
  0xc3   : > { %v459_v4 = vunpack.c.l.b16 %v433_v63 }
  0xc5   : > { %v470_v5 = vpack.c.b16 %v459_v4, %v458_v2 }
  0xc6   : > { %v423_v8 = vpop.f32.mrf.mxu2 }
  0xc7   : > { %v486_v10 = vshrl.u32 %v470_v5, 16  ;;  %v489_v11 = vshll.u32 %v470_v5, 16  ;;  %v441_v12 = vpack.c.bf16 %v423_v8, %v423_v8  ;;  %v561_v5 = vor.u32 %v560_v52, %v556_v62 }
  0xc8   : > { %v406_v13 = vpop.f32.mrf.mxu0 }
  0xc9   : > { %v488_v14 = vrot.slane %v486_v10, 2  ;;  %v491_v15 = vrot.slane %v489_v11, 3  ;;  %v467_v16 = vunpack.c.l.b16 %v441_v12  ;;  %v434_v33 = vpack.c.bf16 %v406_v13, %v406_v13 }
  0xcb   : > { %v2788_v19 = vor.u32 %v491_v15, %v488_v14  ;;  %v474_v20 = vpack.c.b16 %v467_v16, %v466_v9  ;;  %v460_v45 = vunpack.c.l.b16 %v434_v33  ;;  %v2503_v14 = vld [vmem:[%s3499_s2 + $0x60] sm:$0xff] }
  0xcd   : > { %v522_v21 = vshrl.u32 %v474_v20, 16  ;;  %v525_v22 = vshll.u32 %v474_v20, 16  ;;  %v2792_v23 = vsel %vm476_vm0, %v484_v55, %v2788_v19  ;;  %v2504_v55 = vld [vmem:[%s3499_s2 + $0x68] sm:$0xff] }
  0xce   : > { %v426_v27 = vpop.f32.mrf.mxu2  ;;  %1244 = vmatmul.bf16.gmra.mxu0 %v2792_v23  ;;  %v749_v28 = vrot.slane %v2792_v23, 5  ;;  %v620_v30 = vrot.slane %v2792_v23, 1  ;;  %v563_v48 = vshll.u32 %v2792_v23, 16  ;;  %1276 = vmatpush.bf16.msrb.mxu1 %v2504_v55  ;;  %v567_v6 = vshrl.u32 %v2792_v23, 16 }
  0xcf   : > { %v524_v31 = vrot.slane %v522_v21, 2  ;;  %v527_v32 = vrot.slane %v525_v22, 3  ;;  %v442_v34 = vpack.c.bf16 %v426_v27, %v426_v27 }
  0xd0   : > { %v408_v35 = vpop.f32.mrf.mxu0  ;;  %v750_v36 = vsel %vm747_vm3, %v748_v24, %v749_v28  ;;  %v2810_v37 = vsel %vm618_vm4, %v619_v29, %v620_v30  ;;  %v565_v0 = vrot.slane %v563_v48, 1 }
  0xd1   : > { %v528_v38 = vor.u32 %v527_v32, %v524_v31  ;;  %v468_v39 = vunpack.c.l.b16 %v442_v34  ;;  %v435_v40 = vpack.c.bf16 %v408_v35, %v408_v35  ;;  %966 = vmatmul.bf16.vlgmr.msra.gmra.mxu1 %v750_v36  ;;  %v754_v10 = vrot.slane %v2810_v37, 5  ;;  %v2502_v35 = vld [vmem:[%s3499_s2 + $0x58] sm:$0xff] }
  0xd2   : > { %v2850_v12 = vsel %vm554_vm8, %v561_v5, %v565_v0  ;;  %v569_v13 = vor.u32 %v567_v6, %v565_v0  ;;  %1277 = vmatpush.bf16.msrb.mxu1 %v2503_v14  ;;  %v1409_v6 = vrot.slane %v2792_v23, 2 }
  0xd3   : > { %v2821_v44 = vsel %vm476_vm0, %v2798_v26, %v528_v38  ;;  %v475_v46 = vpack.c.b16 %v468_v39, %v468_v39  ;;  %v461_v47 = vunpack.c.l.b16 %v435_v40 }
  0xd4   : > { %v595_v57 = vshll.u32 %v2821_v44, 16  ;;  %v599_v56 = vshrl.u32 %v2821_v44, 16  ;;  %v628_v25 = vrot.slane %v2821_v44, 1 }
  0xd5   : > { %v531_v49 = vshrl.u32 %v475_v46, 16  ;;  %v534_v50 = vshll.u32 %v475_v46, 16  ;;  %v471_v51 = vpack.c.b16 %v461_v47, %v460_v45  ;;  %v751_v45 = vrot.slane %v2850_v12, 5 }
  0xd6   : > { %v428_v53 = vpop.f32.mrf.mxu2  ;;  %v2838_v7 = vrot.slane %v595_v57, 1  ;;  %1278 = vmatpush.bf16.msrb.mxu1 %v2502_v35 }
  0xd7   : > { %v533_v58 = vrot.slane %v531_v49, 2  ;;  %v536_v59 = vrot.slane %v534_v50, 3  ;;  %v495_v60 = vshrl.u32 %v471_v51, 16  ;;  %v498_v61 = vshll.u32 %v471_v51, 16 }
  0xd8   : > { %v411_v63 = vpop.f32.mrf.mxu0  ;;  %v601_v24 = vor.u32 %v599_v56, %v2838_v7 }
  0xd9   : > { %v537_v2 = vor.u32 %v536_v59, %v533_v58  ;;  %v497_v3 = vrot.slane %v495_v60, 2  ;;  %v500_v4 = vrot.slane %v498_v61, 3  ;;  %v2501_v58 = vld [vmem:[%s3499_s2 + $0x50] sm:$0xff]  ;;  %v2534_v60 = vld [vmem:[%s3499_s2 + $0x158] sm:$0xff] }
  0xda   : > { %1279 = vmatpush.bf16.msrb.mxu1 %v2501_v58  ;;  %v2553_v58 = vld [vmem:[%s3499_s2 + $0x1f0] sm:$0xff] }
  0xdb   : > { %v2842_v8 = vsel %vm476_vm0, %v528_v38, %v537_v2  ;;  %v2844_v9 = vor.u32 %v500_v4, %v497_v3  ;;  %v2847_v11 = vsel %vm552_vm7, %v537_v2, 0  ;;  %v2500_v2 = vld [vmem:[%s3499_s2 + $0x48] sm:$0xff] }
  0xdc   : > { %v603_v15 = vshll.u32 %v2842_v8, 16  ;;  %v607_v17 = vshrl.u32 %v2842_v8, 16  ;;  %v688_v18 = vshll.u32 %v2847_v11, 16  ;;  %v2864_v20 = vrot.slane %v2842_v8, 1 }
  0xdd   : > { %v2859_v16 = vsel %vm476_vm0, %v2788_v19, %v2844_v9  ;;  %v436_v19 = vpack.c.bf16 %v411_v63, %v411_v63  ;;  %v692_v36 = vshrl.u32 %v2847_v11, 16  ;;  %v2911_v47 = vrot.slane %v2847_v11, 1 }
  0xde   : > { %1249 = vmatmul.bf16.gmra.mxu0 %v2859_v16  ;;  %v757_v21 = vrot.slane %v2859_v16, 5  ;;  %v571_v22 = vshll.u32 %v2859_v16, 16  ;;  %v622_v27 = vrot.slane %v2859_v16, 1  ;;  %v605_v29 = vrot.slane %v603_v15, 1  ;;  %1280 = vmatpush.bf16.msrb.mxu1 %v2500_v2 }
  0xdf   : > { %v690_v31 = vrot.slane %v688_v18, 1  ;;  %v2887_v38 = vsel %vm618_vm4, %v628_v25, %v2864_v20  ;;  %v462_v48 = vunpack.c.l.b16 %v436_v19  ;;  %v2946_v63 = vsel %vm618_vm4, %v2864_v20, %v2911_v47 }
  0xe0   : > { %v413_v32 = vpop.f32.mrf.mxu0  ;;  %v758_v33 = vsel %vm747_vm3, %v749_v28, %v757_v21  ;;  %v2877_v34 = vrot.slane %v571_v22, 1  ;;  %v2535_v28 = vld [vmem:[%s3499_s2 + $0x160] sm:$0xff]  ;;  %v2897_v40 = vsel %vm618_vm4, %v620_v30, %v622_v27  ;;  %v2900_v41 = vsel %vm554_vm8, %v601_v24, %v605_v29 }
  0xe1   : > { %v437_v39 = vpack.c.bf16 %v413_v32, %v413_v32  ;;  %971 = vmatmul.bf16.gmra.mxu1 %v758_v33  ;;  %v2902_v42 = vor.u32 %v607_v17, %v605_v29  ;;  %v755_v46 = vrot.slane %v2897_v40, 5  ;;  %1047 = vmatpush.bf16.msrb.mxu3 %v2535_v28  ;;  %v777_v52 = vrot.slane %v2900_v41, 5 }
  0xe2   : > { %v2906_v43 = vsel %vm554_vm8, %v569_v13, %v2877_v34  ;;  %v2925_v54 = vor.u32 %v692_v36, %v690_v31  ;;  %v779_v59 = vrot.slane %v2887_v38, 5  ;;  %v785_v3 = vrot.slane %v2946_v63, 5  ;;  %v2533_v36 = vld [vmem:[%s3499_s2 + $0x150] sm:$0xff] }
  0xe3   : > { %v463_v30 = vunpack.c.l.b16 %v437_v39  ;;  %v752_v49 = vrot.slane %v2906_v43, 5  ;;  %v2916_v50 = vsel %vm554_vm8, %v2902_v42, %v690_v31  ;;  %v2921_v51 = vsel %vm747_vm3, %v754_v10, %v755_v46  ;;  %v2499_v31 = vld [vmem:[%s3499_s2 + $0x40] sm:$0xff]  ;;  %v2554_v39 = vld [vmem:[%s3499_s2 + $0x1f8] sm:$0xff] }
  0xe4   : > { %v783_v53 = vrot.slane %v2916_v50, 5  ;;  %v789_v62 = vrot.slane %v2925_v54, 5  ;;  %v791_v5 = vrot.slane %v2911_v47, 5  ;;  %v2960_v13 = vsel %vm747_vm3, %v779_v59, %v785_v3  ;;  %1281 = vmatpush.bf16.msrb.mxu1 %v2499_v31  ;;  %1656 = vmatpush.bf16.msra.mxu0 %v2554_v39 }
  0xe5   : > { %v472_v55 = vpack.c.b16 %v463_v30, %v462_v48  ;;  %v753_v57 = vsel %vm747_vm3, %v751_v45, %v752_v49  ;;  %1048 = vmatpush.bf16.msrb.mxu3 %v2534_v60  ;;  %v1410_v14 = vrot.slane %v2859_v16, 2  ;;  %v1440_v22 = vrot.slane %v2946_v63, 2  ;;  %v2532_v60 = vld [vmem:[%s3499_s2 + $0x148] sm:$0xff] }
  0xe6   : > { %1009 = vmatmul.bf16.vlgmr.msrb.gmra.mxu2 %v753_v57  ;;  %v2940_v61 = vsel %vm747_vm3, %v777_v52, %v783_v53  ;;  %v2953_v4 = vsel %vm747_vm3, %v783_v53, %v789_v62  ;;  %v2964_v15 = vsel %vm747_vm3, %v785_v3, %v791_v5  ;;  %v1446_v23 = vrot.slane %v2911_v47, 2  ;;  %v2552_v5 = vld [vmem:[%s3499_s2 + $0x1e8] sm:$0xff] }
  0xe7   : > { %v504_v0 = vshrl.u32 %v472_v55, 16  ;;  %v507_v1 = vshll.u32 %v472_v55, 16  ;;  %v2967_v18 = vsel %vm547_vm1, %v1409_v6, %v1410_v14  ;;  %v775_v29 = vrot.slane %v2821_v44, 5  ;;  %v2531_v6 = vld [vmem:[%s3499_s2 + $0x140] sm:$0xff] }
  0xe8   : > { %v2988_v32 = vsel %vm547_vm1, %v1440_v22, %v1446_v23  ;;  %v575_v33 = vshrl.u32 %v2859_v16, 16  ;;  %1657 = vmatpush.bf16.msra.mxu0 %v2553_v58  ;;  %v2549_v58 = vld [vmem:[%s3499_s2 + $0x1d0] sm:$0xff]  ;;  %v2508_v16 = vld [vmem:[%s3499_s2 + $0x88] sm:$0xff] }
  0xe9   : > { %v506_v56 = vrot.slane %v504_v0, 2  ;;  %v509_v10 = vrot.slane %v507_v1, 3  ;;  %1049 = vmatpush.bf16.msrb.mxu3 %v2533_v36  ;;  %v781_v36 = vrot.slane %v2842_v8, 5 }
  0xea   : > { %v577_v53 = vor.u32 %v575_v33, %v2877_v34 }
  0xeb   : > { %v510_v17 = vor.u32 %v509_v10, %v506_v56 }
  0xec   : > { %1658 = vmatpush.bf16.msra.mxu0 %v2552_v5 }
  0xed   : > { %v2973_v24 = vsel %vm476_vm0, %v510_v17, %v2798_v26  ;;  %v2977_v19 = vsel %vm476_vm0, %v2844_v9, %v510_v17  ;;  %1050 = vmatpush.bf16.msrb.mxu3 %v2532_v60  ;;  %v2547_v60 = vld [vmem:[%s3499_s2 + $0x1c0] sm:$0xff] }
  0xee   : > { %1254 = vmatmul.bf16.gmra.mxu0 %v2977_v19  ;;  %v763_v26 = vrot.slane %v2977_v19, 5  ;;  %v769_v9 = vrot.slane %v2973_v24, 5  ;;  %v579_v35 = vshll.u32 %v2977_v19, 16  ;;  %v587_v28 = vshll.u32 %v2973_v24, 16 }
  0xef   : > { %v626_v45 = vrot.slane %v2973_v24, 1  ;;  %v583_v56 = vshrl.u32 %v2977_v19, 16  ;;  %v1418_v10 = vrot.slane %v2977_v19, 2  ;;  %v1424_v33 = vrot.slane %v2973_v24, 2 }
  0xf0   : > { %v764_v48 = vsel %vm747_vm3, %v757_v21, %v763_v26  ;;  %v776_v30 = vsel %vm747_vm3, %v769_v9, %v775_v29  ;;  %v581_v55 = vrot.slane %v579_v35, 1  ;;  %v589_v57 = vrot.slane %v587_v28, 1  ;;  %v2550_v28 = vld [vmem:[%s3499_s2 + $0x1d8] sm:$0xff] }
  0xf1   : > { %976 = vmatmul.bf16.gmra.mxu1 %v764_v48  ;;  %986 = vmatmul.bf16.vlgmr.msra.gmra.mxu3 %v776_v30  ;;  %v591_v21 = vshrl.u32 %v2973_v24, 16  ;;  %v3020_v34 = vsel %vm618_vm4, %v626_v45, %v628_v25  ;;  %v3049_v31 = vsel %vm547_vm1, %v1410_v14, %v1418_v10  ;;  %v1430_v35 = vrot.slane %v2821_v44, 2 }
  0xf2   : > { %v3023_v62 = vsel %vm554_vm8, %v577_v53, %v581_v55  ;;  %1051 = vmatpush.bf16.msrb.mxu3 %v2531_v6  ;;  %v585_v17 = vor.u32 %v583_v56, %v581_v55  ;;  %v3055_v39 = vsel %vm547_vm1, %v1418_v10, %v1424_v33  ;;  %v770_v48 = vsel %vm747_vm3, %v763_v26, %v769_v9  ;;  %v2546_v55 = vld [vmem:[%s3499_s2 + $0x1b8] sm:$0xff]  ;;  %v2548_v26 = vld [vmem:[%s3499_s2 + $0x1c8] sm:$0xff]  ;;  %v2561_v6 = vld [vmem:[%s3499_s2 + $0x230] sm:$0xff] }
  0xf3   : > { %v759_v0 = vrot.slane %v3023_v62, 5  ;;  %v593_v1 = vor.u32 %v591_v21, %v589_v57  ;;  %v782_v30 = vsel %vm747_vm3, %v775_v29, %v781_v36  ;;  %v2562_v9 = vld [vmem:[%s3499_s2 + $0x238] sm:$0xff]  ;;  %v787_v21 = vrot.slane %v2847_v11, 5  ;;  %v2544_v56 = vld [vmem:[%s3499_s2 + $0x1a8] sm:$0xff] }
  0xf4   : > { %v3064_v14 = vsel %vm554_vm8, %v585_v17, %v589_v57  ;;  %v2514_v57 = vld [vmem:[%s3499_s2 + $0xb8] sm:$0xff]  ;;  %1699 = vmatpush.bf16.msra.mxu1 %v2562_v9  ;;  %v624_v10 = vrot.slane %v2977_v19, 1  ;;  %v1412_v19 = vrot.slane %v2906_v43, 2 }
  0xf5   : > { %v760_v2 = vsel %vm747_vm3, %v752_v49, %v759_v0  ;;  %v3031_v3 = vsel %vm554_vm8, %v593_v1, %v2838_v7  ;;  %v2551_v7 = vld [vmem:[%s3499_s2 + $0x1e0] sm:$0xff]  ;;  %v765_v53 = vrot.slane %v3064_v14, 5  ;;  %1317 = vmatpush.bf16.msra.mxu2 %v2514_v57  ;;  %v788_v1 = vsel %vm747_vm3, %v781_v36, %v787_v21  ;;  %v2510_v17 = vld [vmem:[%s3499_s2 + $0x98] sm:$0xff]  ;;  %v2509_v36 = vld [vmem:[%s3499_s2 + $0x90] sm:$0xff] }
  0xf6   : > { %1014 = vmatmul.bf16.gmra.mxu2 %v760_v2  ;;  %v771_v25 = vrot.slane %v3031_v3, 5  ;;  %1659 = vmatpush.bf16.msra.mxu0 %v2551_v7  ;;  %v2513_v2 = vld [vmem:[%s3499_s2 + $0xb0] sm:$0xff]  ;;  %v2560_v7 = vld [vmem:[%s3499_s2 + $0x228] sm:$0xff] }
  0xf7   : > { %1613 = vmatpush.bf16.msra.mxu3 %v2546_v55  ;;  %v766_v29 = vsel %vm747_vm3, %v759_v0, %v765_v53  ;;  %v2545_v0 = vld [vmem:[%s3499_s2 + $0x1b0] sm:$0xff] }
  0xf8   : > { %v778_v49 = vsel %vm747_vm3, %v771_v25, %v777_v52  ;;  %v3060_v52 = vsel %vm547_vm1, %v1424_v33, %v1430_v35  ;;  %v772_v5 = vsel %vm747_vm3, %v765_v53, %v771_v25  ;;  %1700 = vmatpush.bf16.msra.mxu1 %v2561_v6  ;;  %v2511_v25 = vld [vmem:[%s3499_s2 + $0xa0] sm:$0xff]  ;;  %v3128_v33 = vsel %vm618_vm4, %v622_v27, %v624_v10  ;;  %v2556_v6 = vld [vmem:[%s3499_s2 + $0x208] sm:$0xff] }
  0xf9   : > { %1318 = vmatpush.bf16.msra.mxu2 %v2513_v2  ;;  %v1420_v53 = vrot.slane %v3064_v14, 2  ;;  %v2540_v2 = vld [vmem:[%s3499_s2 + $0x188] sm:$0xff] }
  0xfa   : > { %1660 = vmatpush.bf16.msra.mxu0 %v2550_v28  ;;  %v761_v28 = vrot.slane %v3128_v33, 5 }
  0xfb   : > { %1614 = vmatpush.bf16.msra.mxu3 %v2545_v0  ;;  %v2557_v0 = vld [vmem:[%s3499_s2 + $0x210] sm:$0xff] }
  0xfc   : > { %1701 = vmatpush.bf16.msra.mxu1 %v2560_v7  ;;  %v762_v27 = vsel %vm747_vm3, %v755_v46, %v761_v28  ;;  %v2542_v46 = vld [vmem:[%s3499_s2 + $0x198] sm:$0xff]  ;;  %v2555_v7 = vld [vmem:[%s3499_s2 + $0x200] sm:$0xff] }
  0xfe   : > { %1259 = vmatmul.bf16.gmra.mxu0 %v2973_v24 }
  0xff   : > { %1661 = vmatpush.bf16.msra.mxu0 %v2549_v58  ;;  %1615 = vmatpush.bf16.msra.mxu3 %v2544_v56 }
 0x101   : > { %981 = vmatmul.bf16.gmra.mxu1 %v770_v48  ;;  %991 = vmatmul.bf16.gmra.mxu3 %v782_v30  ;;  %v2559_v30 = vld [vmem:[%s3499_s2 + $0x220] sm:$0xff] }
 0x102   : > { %1702 = vmatpush.bf16.msra.mxu1 %v2559_v30 }
 0x103   : > { %1662 = vmatpush.bf16.msra.mxu0 %v2548_v26  ;;  %v1426_v26 = vrot.slane %v3031_v3, 2 }
 0x106   : > { %1019 = vmatmul.bf16.gmra.mxu2 %v766_v29  ;;  %v2558_v29 = vld [vmem:[%s3499_s2 + $0x218] sm:$0xff] }
 0x107   : > { %1663 = vmatpush.bf16.msra.mxu0 %v2547_v60  ;;  %1703 = vmatpush.bf16.msra.mxu1 %v2558_v29  ;;  %v1427_v60 = vsel %vm547_vm1, %v1420_v53, %v1426_v26  ;;  %v1415_v29 = vrot.slane %v2897_v40, 2 }
 0x10b   : > { %1704 = vmatpush.bf16.msra.mxu1 %v2557_v0 }
 0x10e   : > { %1264 = vmatmul.bf16.gmra.mxu0 %v2821_v44 }
 0x10f   : > { %1705 = vmatpush.bf16.msra.mxu1 %v2556_v6 }
 0x111   : > { %996 = vmatmul.bf16.gmra.mxu3 %v788_v1  ;;  %1282 = vmatmul.bf16.vlgmr.msrb.gmra.mxu1 %v2850_v12  ;;  %v2512_v12 = vld [vmem:[%s3499_s2 + $0xa8] sm:$0xff] }
 0x112   : > { %1319 = vmatpush.bf16.msra.mxu2 %v2512_v12  ;;  %v1432_v12 = vrot.slane %v2900_v41, 2 }
 0x113   : > { %1706 = vmatpush.bf16.msra.mxu1 %v2555_v7 }
 0x116   : > { %1024 = vmatmul.bf16.gmra.mxu2 %v772_v5 }
 0x117   : > { %1320 = vmatpush.bf16.msra.mxu2 %v2511_v25 }
 0x11b   : > { %1321 = vmatpush.bf16.msra.mxu2 %v2510_v17  ;;  %v2539_v17 = vld [vmem:[%s3499_s2 + $0x180] sm:$0xff] }
 0x11e   : > { %1269 = vmatmul.bf16.gmra.mxu0 %v2842_v8 }
 0x11f   : > { %1322 = vmatpush.bf16.msra.mxu2 %v2509_v36 }
 0x121   : > { %1052 = vmatmul.bf16.vlgmr.msrb.gmra.mxu3 %v2921_v51  ;;  %1287 = vmatmul.bf16.gmra.mxu1 %v2906_v43  ;;  %v1413_v51 = vrot.slane %v3023_v62, 2  ;;  %v2507_v43 = vld [vmem:[%s3499_s2 + $0x80] sm:$0xff] }
 0x123   : > { %v1414_v48 = vsel %vm547_vm1, %v1412_v19, %v1413_v51  ;;  %1323 = vmatpush.bf16.msra.mxu2 %v2508_v16  ;;  %v1421_v58 = vsel %vm547_vm1, %v1413_v51, %v1420_v53  ;;  %v1438_v19 = vrot.slane %v2916_v50, 2 }
 0x126   : > { %1029 = vmatmul.bf16.gmra.mxu2 %v778_v49  ;;  %v2543_v49 = vld [vmem:[%s3499_s2 + $0x1a0] sm:$0xff] }
 0x127   : > { %1616 = vmatpush.bf16.msra.mxu3 %v2543_v49  ;;  %1324 = vmatpush.bf16.msra.mxu2 %v2507_v43 }
 0x12b   : > { %1617 = vmatpush.bf16.msra.mxu3 %v2542_v46  ;;  %v1444_v46 = vrot.slane %v2925_v54, 2 }
 0x12e   : > { %1664 = vmatmul.bf16.vlgmr.msra.gmra.mxu0 %v1414_v48 }
 0x131   : > { %1057 = vmatmul.bf16.gmra.mxu3 %v762_v27  ;;  %1292 = vmatmul.bf16.gmra.mxu1 %v3023_v62  ;;  %v3160_v62 = vsel %vm618_vm4, %v624_v10, %v626_v45  ;;  %v2541_v45 = vld [vmem:[%s3499_s2 + $0x190] sm:$0xff] }
 0x132   : > { %v767_v57 = vrot.slane %v3160_v62, 5  ;;  %1618 = vmatpush.bf16.msra.mxu3 %v2541_v45 }
 0x136   : > { %1034 = vmatmul.bf16.gmra.mxu2 %v2940_v61  ;;  %v768_v61 = vsel %vm747_vm3, %v761_v28, %v767_v57  ;;  %1619 = vmatpush.bf16.msra.mxu3 %v2540_v2  ;;  %v1439_v28 = vsel %vm547_vm1, %v1432_v12, %v1438_v19 }
 0x13a   : > { %1620 = vmatpush.bf16.msra.mxu3 %v2539_v17 }
 0x13b   : > { %v3162_v55 = vpop.f32.mrf.mxu0 }
 0x13e   : > { %1669 = vmatmul.bf16.gmra.mxu0 %v1421_v58 }
 0x141   : > { %1062 = vmatmul.bf16.gmra.mxu3 %v768_v61  ;;  %1297 = vmatmul.bf16.gmra.mxu1 %v3064_v14  ;;  %v773_v14 = vrot.slane %v3020_v34, 5 }
 0x143   : > { %v3171_v24 = vpop.f32.mrf.mxu0 }
 0x146   : > { %1039 = vmatmul.bf16.gmra.mxu2 %v2953_v4  ;;  %v774_v4 = vsel %vm747_vm3, %v767_v57, %v773_v14 }
 0x14b   : > { %v3178_v9 = vpop.f32.mrf.mxu0 }
 0x14e   : > { %v967_v21 = vpop.f32.mrf.mxu1  ;;  %1674 = vmatmul.bf16.gmra.mxu0 %v1427_v60 }
 0x151   : > { %1067 = vmatmul.bf16.gmra.mxu3 %v774_v4  ;;  %1302 = vmatmul.bf16.gmra.mxu1 %v3031_v3  ;;  %v1433_v3 = vsel %vm547_vm1, %v1426_v26, %v1432_v12  ;;  %v1756_v12 = vld [vmem:[%s3500_s3 + $0x8] sm:$0xff] }
 0x153   : > { %v3187_v1 = vpop.f32.mrf.mxu0 }
 0x156   : > { %v969_v5 = vpop.f32.mrf.mxu1  ;;  %1325 = vmatmul.bf16.vlgmr.msra.gmra.mxu2 %v2810_v37  ;;  %v780_v37 = vsel %vm747_vm3, %v773_v14, %v779_v59 }
 0x15b   : > { %v3196_v56 = vpop.f32.mrf.mxu0 }
 0x15e   : > { %v972_v25 = vpop.f32.mrf.mxu1  ;;  %1679 = vmatmul.bf16.gmra.mxu0 %v1433_v3 }
 0x161   : > { %1072 = vmatmul.bf16.gmra.mxu3 %v780_v37  ;;  %1307 = vmatmul.bf16.gmra.mxu1 %v2900_v41 }
 0x163   : > { %v3207_v10 = vpop.f32.mrf.mxu0 }
 0x166   : > { %v974_v51 = vpop.f32.mrf.mxu1  ;;  %1330 = vmatmul.bf16.gmra.mxu2 %v2897_v40  ;;  %v2635_v40 = vmov 0  }
 0x167   : > { %2624 = vset.pattern.permute.xlu0 %v2635_v40  ;;  %2625 = vset.pattern.permute.xlu1 %v2635_v40 }
 0x168   : > { %2626 = vset.pattern.permute.xlu2 %v2635_v40 }
 0x169   : > { %v1010_v36 = vpop.f32.mrf.mxu2 }
 0x16a   : > { %v3214_v49 = vadd.f32 %v1010_v36, %v967_v21 }
 0x16b   : > { %v3216_v59 = vpop.f32.mrf.mxu0 }
 0x16e   : > { %v977_v41 = vpop.f32.mrf.mxu1  ;;  %1684 = vmatmul.bf16.gmra.mxu0 %v1439_v28 }
 0x171   : > { %v1012_v48 = vpop.f32.mrf.mxu2  ;;  %1077 = vmatmul.bf16.gmra.mxu3 %v2960_v13  ;;  %1312 = vmatmul.bf16.gmra.mxu1 %v2902_v42  ;;  %v1416_v42 = vrot.slane %v3128_v33, 2  ;;  %v1445_v13 = vsel %vm547_vm1, %v1438_v19, %v1444_v46 }
 0x172   : > { %v3221_v16 = vadd.f32 %v1012_v48, %v969_v5  ;;  %v1422_v5 = vrot.slane %v3160_v62, 2 }
 0x173   : > { %v3223_v27 = vpop.f32.mrf.mxu0  ;;  %v1417_v45 = vsel %vm547_vm1, %v1415_v29, %v1416_v42 }
 0x174   : > { %v3225_v43 = vpop.f32.mrf.mxu3  ;;  %v1423_v3 = vsel %vm547_vm1, %v1416_v42, %v1422_v5 }
 0x176   : > { %v979_v50 = vpop.f32.mrf.mxu1  ;;  %1335 = vmatmul.bf16.gmra.mxu2 %v3128_v33  ;;  %v1755_v33 = vld [vmem:[%s3500_s3] sm:$0xff] }
 0x177   : > { %1770 = vperm.xlu0 %2624, %v1755_v33  }
 0x179   : > { %v1015_v30 = vpop.f32.mrf.mxu2 }
 0x17a   : > { %v3229_v53 = vadd.f32 %v1015_v30, %v972_v25 }
 0x17b   : > { %v3231_v57 = vpop.f32.mrf.mxu0 }
 0x17c   : > { %v3233_v58 = vpop.f32.mrf.mxu3 }
 0x17e   : > { %v982_v61 = vpop.f32.mrf.mxu1  ;;  %1689 = vmatmul.bf16.gmra.mxu0 %v1445_v13 }
 0x17f   : > { %1775 = vperm.xlu0 %2624, %v1756_v12   ;;  %v1434_v12 = vrot.slane %v2887_v38, 2 }
 0x181   : > { %v1017_v26 = vpop.f32.mrf.mxu2  ;;  %1082 = vmatmul.bf16.gmra.mxu3 %v2964_v15  ;;  %1707 = vmatmul.bf16.vlgmr.msra.gmra.mxu1 %v1417_v45 }
 0x182   : > { %v3240_v54 = vadd.f32 %v1017_v26, %v974_v51  ;;  %v1757_v51 = vld [vmem:[%s3500_s3 + $0x10] sm:$0xff] }
 0x183   : > { %v3242_v14 = vpop.f32.mrf.mxu0  ;;  %1780 = vperm.xlu1 %2625, %v1757_v51  }
 0x184   : > { %v3244_v60 = vpop.f32.mrf.mxu3 }
 0x186   : > { %v984_v21 = vpop.f32.mrf.mxu1  ;;  %1340 = vmatmul.bf16.gmra.mxu2 %v3160_v62 }
 0x189   : > { %v1020_v0 = vpop.f32.mrf.mxu2 }
 0x18a   : > { %v3250_v15 = vadd.f32 %v1020_v0, %v977_v41  ;;  %v1428_v41 = vrot.slane %v3020_v34, 2 }
 0x18b   : > { %v3252_v4 = vpop.f32.mrf.mxu0 }
 0x18c   : > { %v3254_v2 = vpop.f32.mrf.mxu3  ;;  %v1429_v30 = vsel %vm547_vm1, %v1422_v5, %v1428_v41 }
 0x18e   : > { %v1283_v6 = vpop.f32.mrf.mxu1  ;;  %1694 = vmatmul.bf16.gmra.mxu0 %v1444_v46 }
 0x191   : > { %v1022_v25 = vpop.f32.mrf.mxu2  ;;  %1621 = vmatmul.bf16.vlgmr.msra.gmra.mxu3 %v2967_v18  ;;  %1712 = vmatmul.bf16.gmra.mxu1 %v1423_v3  ;;  %v1435_v3 = vsel %vm547_vm1, %v1428_v41, %v1434_v12 }
 0x192   : > { %v3262_v7 = vadd.f32 %v1022_v25, %v979_v50  ;;  %v1758_v50 = vld [vmem:[%s3500_s3 + $0x18] sm:$0xff] }
 0x193   : > { %v3264_v37 = vpop.f32.mrf.mxu0  ;;  %1785 = vperm.xlu1 %2625, %v1758_v50  }
 0x194   : > { %v3266_v17 = vpop.f32.mrf.mxu3 }
 0x196   : > { %v1285_v62 = vpop.f32.mrf.mxu1  ;;  %1345 = vmatmul.bf16.gmra.mxu2 %v3020_v34 }
 0x199   : > { %v1025_v36 = vpop.f32.mrf.mxu2 }
 0x19a   : > { %v3272_v19 = vadd.f32 %v1025_v36, %v982_v61 }
 0x19b   : > { %v3274_v18 = vpop.f32.mrf.mxu0 }
 0x19c   : > { %v999_v28 = vpop.f32.mrf.mxu3 }
 0x19e   : > { %v1288_v48 = vpop.f32.mrf.mxu1 }
 0x1a1   : > { %v1027_v46 = vpop.f32.mrf.mxu2  ;;  %1626 = vmatmul.bf16.gmra.mxu3 %v3049_v31  ;;  %1717 = vmatmul.bf16.gmra.mxu1 %v1429_v30  ;;  %v1441_v30 = vsel %vm547_vm1, %v1434_v12, %v1440_v22 }
 0x1a2   : > { %v3282_v42 = vadd.f32 %v1027_v46, %v984_v21 }
 0x1a3   : > { %v1272_v13 = vpop.f32.mrf.mxu0 }
 0x1a4   : > { %v1053_v61 = vpop.f32.mrf.mxu3 }
 0x1a5   : > { %v1054_v29 = vadd.f32 %v1053_v61, %v3214_v49 }
 0x1a6   : > { %v1290_v45 = vpop.f32.mrf.mxu1  ;;  %1350 = vmatmul.bf16.gmra.mxu2 %v2887_v38 }
 0x1a7   : > { %v1241_v34 = vadd.f32 %v3162_v55, %v1054_v29 }
 0x1a9   : > { %v1030_v26 = vpop.f32.mrf.mxu2  ;;  %v3287_v33 = vadd.f32 %v1283_v6, %v1241_v34  ;;  %v1760_v34 = vld [vmem:[%s3500_s3 + $0x28] sm:$0xff] }
 0x1aa   : > { %v3290_v40 = vadd.f32 %v1030_v26, %v3225_v43 }
 0x1ab   : > { %v3292_v0 = vpop.f32.mrf.mxu0 }
 0x1ac   : > { %v1055_v31 = vpop.f32.mrf.mxu3 }
 0x1ad   : > { %v1056_v21 = vadd.f32 %v1055_v31, %v3221_v16 }
 0x1ae   : > { %v1293_v5 = vpop.f32.mrf.mxu1 }
 0x1af   : > { %v1243_v49 = vadd.f32 %v3171_v24, %v1056_v21  ;;  %v1436_v21 = vrot.slane %v2842_v8, 2 }
 0x1b1   : > { %v1032_v25 = vpop.f32.mrf.mxu2  ;;  %1631 = vmatmul.bf16.gmra.mxu3 %v3055_v39  ;;  %1722 = vmatmul.bf16.gmra.mxu1 %v1435_v3  ;;  %v3299_v55 = vadd.f32 %v1285_v62, %v1243_v49  ;;  %v1761_v39 = vld [vmem:[%s3500_s3 + $0x30] sm:$0xff] }
 0x1b2   : > { %v3302_v43 = vadd.f32 %v1032_v25, %v3233_v58  ;;  %1800 = vperm.xlu0 %2624, %v1761_v39  }
 0x1b3   : > { %v3304_v6 = vpop.f32.mrf.mxu0 }
 0x1b4   : > { %v1058_v51 = vpop.f32.mrf.mxu3 }
 0x1b5   : > { %v1059_v16 = vadd.f32 %v1058_v51, %v3229_v53 }
 0x1b6   : > { %v1295_v36 = vpop.f32.mrf.mxu1  ;;  %1355 = vmatmul.bf16.gmra.mxu2 %v2864_v20 }
 0x1b7   : > { %v1246_v38 = vadd.f32 %v3178_v9, %v1059_v16  ;;  %v1759_v9 = vld [vmem:[%s3500_s3 + $0x20] sm:$0xff] }
 0x1b8   : > { %1790 = vperm.xlu2 %2626, %v1759_v9  }
 0x1b9   : > { %v1035_v24 = vpop.f32.mrf.mxu2  ;;  %v3312_v62 = vadd.f32 %v1288_v48, %v1246_v38  ;;  %v1762_v48 = vld [vmem:[%s3500_s3 + $0x38] sm:$0xff] }
 0x1ba   : > { %v3315_v58 = vadd.f32 %v1035_v24, %v3244_v60  ;;  %v1764_v60 = vld [vmem:[%s3500_s3 + $0x48] sm:$0xff]  ;;  %1805 = vperm.xlu1 %2625, %v1762_v48   ;;  %v1766_v48 = vld [vmem:[%s3500_s3 + $0x58] sm:$0xff] }
 0x1bb   : > { %v3317_v28 = vpop.f32.mrf.mxu0  ;;  %1815 = vperm.xlu0 %2624, %v1764_v60  }
 0x1bc   : > { %v1060_v41 = vpop.f32.mrf.mxu3 }
 0x1bd   : > { %v1061_v53 = vadd.f32 %v1060_v41, %v3240_v54 }
 0x1be   : > { %v1298_v50 = vpop.f32.mrf.mxu1 }
 0x1bf   : > { %v1248_v20 = vadd.f32 %v3187_v1, %v1061_v53 }
 0x1c0   : > { %1795 = vperm.xlu2 %2626, %v1760_v34  }
 0x1c1   : > { %v1037_v54 = vpop.f32.mrf.mxu2  ;;  %1636 = vmatmul.bf16.gmra.mxu3 %v3060_v52  ;;  %1727 = vmatmul.bf16.gmra.mxu1 %v1441_v30  ;;  %v3334_v1 = vadd.f32 %v1290_v45, %v1248_v20  ;;  %v1767_v52 = vld [vmem:[%s3500_s3 + $0x60] sm:$0xff] }
 0x1c2   : > { %v3337_v46 = vadd.f32 %v1037_v54, %v3254_v2 }
 0x1c3   : > { %v3339_v13 = vpop.f32.mrf.mxu0  ;;  %1830 = vperm.xlu0 %2624, %v1767_v52  }
 0x1c4   : > { %v1063_v61 = vpop.f32.mrf.mxu3 }
 0x1c5   : > { %v1064_v29 = vadd.f32 %v1063_v61, %v3250_v15 }
 0x1c6   : > { %v1300_v63 = vpop.f32.mrf.mxu1 }
 0x1c7   : > { %v1251_v22 = vadd.f32 %v3196_v56, %v1064_v29  ;;  %v1765_v56 = vld [vmem:[%s3500_s3 + $0x50] sm:$0xff] }
 0x1c8   : > { %1820 = vperm.xlu1 %2625, %v1765_v56  }
 0x1c9   : > { %v1040_v2 = vpop.f32.mrf.mxu2  ;;  %v1294_v45 = vadd.f32 %v1293_v5, %v1251_v22 }
 0x1ca   : > { %v3350_v26 = vadd.f32 %v1040_v2, %v3266_v17  ;;  %v1437_v17 = vsel %vm547_vm1, %v1430_v35, %v1436_v21 }
 0x1cb   : > { %v3352_v31 = vpop.f32.mrf.mxu0 }
 0x1cc   : > { %v1065_v15 = vpop.f32.mrf.mxu3 }
 0x1cd   : > { %v1066_v12 = vadd.f32 %v1065_v15, %v3262_v7 }
 0x1ce   : > { %v1303_v49 = vpop.f32.mrf.mxu1 }
 0x1cf   : > { %v1253_v3 = vadd.f32 %v3207_v10, %v1066_v12 }
 0x1d1   : > { %v1042_v5 = vpop.f32.mrf.mxu2  ;;  %1641 = vmatmul.bf16.gmra.mxu3 %v1437_v17  ;;  %1732 = vmatmul.bf16.gmra.mxu1 %v2988_v32  ;;  %v3364_v25 = vadd.f32 %v1295_v36, %v1253_v3  ;;  %v1442_v32 = vrot.slane %v2847_v11, 2 }
 0x1d3   : > { %v3366_v51 = vpop.f32.mrf.mxu0 }
 0x1d4   : > { %v1068_v16 = vpop.f32.mrf.mxu3 }
 0x1d5   : > { %v1069_v8 = vadd.f32 %v1068_v16, %v3272_v19  ;;  %v1763_v19 = vld [vmem:[%s3500_s3 + $0x40] sm:$0xff] }
 0x1d6   : > { %v1305_v38 = vpop.f32.mrf.mxu1  ;;  %1810 = vperm.xlu2 %2626, %v1763_v19  }
 0x1d7   : > { %v1256_v7 = vadd.f32 %v3216_v59, %v1069_v8  ;;  %v1443_v59 = vsel %vm547_vm1, %v1436_v21, %v1442_v32 }
 0x1d9   : > { %v1326_v39 = vpop.f32.mrf.mxu2  ;;  %v1299_v10 = vadd.f32 %v1298_v50, %v1256_v7 }
 0x1da   : > { %v3371_v44 = vadd.f32 %v1326_v39, %v3287_v33 }
 0x1db   : > { %v3373_v35 = vpop.f32.mrf.mxu0 }
 0x1dc   : > { %v1070_v24 = vpop.f32.mrf.mxu3 }
 0x1dd   : > { %v1071_v36 = vadd.f32 %v1070_v24, %v3282_v42 }
 0x1de   : > { %v1308_v41 = vpop.f32.mrf.mxu1  ;;  %1825 = vperm.xlu2 %2626, %v1766_v48  }
 0x1df   : > { %v1258_v53 = vadd.f32 %v3223_v27, %v1071_v36 }
 0x1e1   : > { %v1328_v50 = vpop.f32.mrf.mxu2  ;;  %1646 = vmatmul.bf16.gmra.mxu3 %v1443_v59  ;;  %1737 = vmatmul.bf16.gmra.mxu1 %v1446_v23  ;;  %v3384_v33 = vadd.f32 %v1300_v63, %v1258_v53 }
 0x1e2   : > { %v1329_v48 = vadd.f32 %v1328_v50, %v3299_v55 }
 0x1e3   : > { %v3386_v11 = vpop.f32.mrf.mxu0 }
 0x1e4   : > { %v1073_v42 = vpop.f32.mrf.mxu3 }
 0x1e5   : > { %v1074_v20 = vadd.f32 %v1073_v42, %v3290_v40 }
 0x1e6   : > { %v1310_v27 = vpop.f32.mrf.mxu1 }
 0x1e7   : > { %v1261_v9 = vadd.f32 %v3231_v57, %v1074_v20 }
 0x1e9   : > { %v1331_v60 = vpop.f32.mrf.mxu2  ;;  %v1304_v30 = vadd.f32 %v1303_v49, %v1261_v9  ;;  %v1771_v19 = vpop.permute.xlu0 %1770 }
 0x1ea   : > { %v3394_v47 = vadd.f32 %v1331_v60, %v3312_v62 }
 0x1eb   : > { %v3396_v23 = vpop.f32.mrf.mxu0 }
 0x1ec   : > { %v1075_v54 = vpop.f32.mrf.mxu3 }
 0x1ed   : > { %v1076_v61 = vadd.f32 %v1075_v54, %v3302_v43 }
 0x1ee   : > { %v1313_v29 = vpop.f32.mrf.mxu1 }
 0x1ef   : > { %v1263_v40 = vadd.f32 %v3242_v14, %v1076_v61 }
 0x1f1   : > { %v3400_v63 = vpop.f32.mrf.mxu2  ;;  %1651 = vmatmul.bf16.gmra.mxu3 %v1442_v32  ;;  %v3402_v57 = vadd.f32 %v1305_v38, %v1263_v40  ;;  %v1776_v54 = vpop.permute.xlu0 %1775 }
 0x1f3   : > { %v3404_v22 = vpop.f32.mrf.mxu0 }
 0x1f4   : > { %v1078_v34 = vpop.f32.mrf.mxu3 }
 0x1f5   : > { %v1079_v52 = vadd.f32 %v1078_v34, %v3315_v58 }
 0x1f6   : > { %v1315_v62 = vpop.f32.mrf.mxu1 }
 0x1f7   : > { %v1266_v2 = vadd.f32 %v3252_v4, %v1079_v52  ;;  %v1781_v62 = vpop.permute.xlu1 %1780 }
 0x1f9   : > { %v1336_v56 = vpop.f32.mrf.mxu2  ;;  %v1309_v15 = vadd.f32 %v1308_v41, %v1266_v2 }
 0x1fa   : > { %v3408_v21 = vadd.f32 %v1336_v56, %v1294_v45 }
 0x1fb   : > { %v3410_v43 = vpop.f32.mrf.mxu0 }
 0x1fc   : > { %v1080_v14 = vpop.f32.mrf.mxu3 }
 0x1fd   : > { %v1081_v12 = vadd.f32 %v1080_v14, %v3337_v46 }
 0x1fe   : > { %v1708_v49 = vpop.f32.mrf.mxu1 }
 0x1ff   : > { %v1268_v3 = vadd.f32 %v3264_v37, %v1081_v12 }
 0x201   : > { %v3414_v17 = vpop.f32.mrf.mxu2  ;;  %v3416_v5 = vadd.f32 %v1310_v27, %v1268_v3 }
 0x203   : > { %v3418_v58 = vpop.f32.mrf.mxu0 }
 0x204   : > { %v1083_v16 = vpop.f32.mrf.mxu3 }
 0x205   : > { %v1084_v4 = vadd.f32 %v1083_v16, %v3350_v26 }
 0x206   : > { %v1710_v8 = vpop.f32.mrf.mxu1 }
 0x207   : > { %v1271_v45 = vadd.f32 %v3274_v18, %v1084_v4 }
 0x209   : > { %v1341_v38 = vpop.f32.mrf.mxu2  ;;  %v3422_v7 = vadd.f32 %v1313_v29, %v1271_v45 }
 0x20a   : > { %v3424_v39 = vadd.f32 %v1341_v38, %v1299_v10 }
 0x20b   : > { %v3426_v46 = vpop.f32.mrf.mxu0 }
 0x20c   : > { %v1085_v37 = vpop.f32.mrf.mxu3 }
 0x20e   : > { %v1713_v24 = vpop.f32.mrf.mxu1 }
 0x211   : > { %v3428_v32 = vpop.f32.mrf.mxu2 }
 0x213   : > { %v1697_v36 = vpop.f32.mrf.mxu0 }
 0x214   : > { %v1622_v41 = vpop.f32.mrf.mxu3 }
 0x215   : > { %v1666_v53 = vadd.f32 %v3292_v0, %v1622_v41  ;;  %v1786_v41 = vpop.permute.xlu1 %1785 }
 0x216   : > { %v1715_v26 = vpop.f32.mrf.mxu1 }
 0x217   : > { %v1709_v59 = vadd.f32 %v1708_v49, %v1666_v53 }
 0x219   : > { %v1346_v18 = vpop.f32.mrf.mxu2  ;;  %v1742_v10 = vadd.f32 %v1709_v59, %v3371_v44 }
 0x21a   : > { %v3431_v42 = vadd.f32 %v1346_v18, %v1304_v30 }
 0x21b   : > { %v1833_v61 = vmul.f32 %v1771_v19, %v1742_v10 }
 0x21c   : > { %v1624_v20 = vpop.f32.mrf.mxu3 }
 0x21d   : > { %v1668_v27 = vadd.f32 %v3304_v6, %v1624_v20  ;;  %v1891_v6 = vmul.f32 %v1833_v61, %v1742_v10 }
 0x21e   : > { %v1718_v9 = vpop.f32.mrf.mxu1 }
 0x21f   : > { %v1711_v60 = vadd.f32 %v1710_v8, %v1668_v27 }
 0x221   : > { %v1743_v29 = vadd.f32 %v1711_v60, %v1329_v48  ;;  %v3436_v0 = vpop.f32.mrf.mxu2 }
 0x223   : > { %v2566_v30 = vpack.c.bf16 %v1743_v29, %v1742_v10  ;;  %v1834_v44 = vmul.f32 %v1776_v54, %v1743_v29 }
 0x224   : > { %v1627_v40 = vpop.f32.mrf.mxu3 }
 0x225   : > { %2567 = vst [vmem:[%s3443_s25] sm:$0xff] %v2566_v30   ;;  %v1872_v34 = vadd.f32 %v1834_v44, %v1833_v61  ;;  %v1892_v55 = vmul.f32 %v1834_v44, %v1743_v29  ;;  %v1671_v50 = vadd.f32 %v3317_v28, %v1627_v40  ;;  %v1334_v28 = vadd.f32 %v3400_v63, %v3334_v1 }
 0x226   : > { %v1720_v52 = vpop.f32.mrf.mxu1  ;;  %v1339_v44 = vadd.f32 %v3414_v17, %v3364_v25 }
 0x227   : > { %v1904_v2 = vadd.f32 %v1892_v55, %v1891_v6  ;;  %v1714_v56 = vadd.f32 %v1713_v24, %v1671_v50 }
 0x229   : > { %v1744_v14 = vadd.f32 %v1714_v56, %v3394_v47  ;;  %v1351_v12 = vpop.f32.mrf.mxu2 }
 0x22a   : > { %v3448_v49 = vadd.f32 %v1351_v12, %v1309_v15 }
 0x22b   : > { %v1835_v3 = vmul.f32 %v1781_v62, %v1744_v14 }
 0x22c   : > { %v1629_v16 = vpop.f32.mrf.mxu3 }
 0x22d   : > { %v1873_v4 = vadd.f32 %v1872_v34, %v1835_v3  ;;  %v1893_v8 = vmul.f32 %v1835_v3, %v1744_v14  ;;  %v1673_v45 = vadd.f32 %v3339_v13, %v1629_v16  ;;  %v1791_v13 = vpop.permute.xlu2 %1790  ;;  %v1801_v3 = vpop.permute.xlu0 %1800 }
 0x22e   : > { %v1723_v38 = vpop.f32.mrf.mxu1 }
 0x22f   : > { %v1905_v37 = vadd.f32 %v1904_v2, %v1893_v8  ;;  %v1716_v36 = vadd.f32 %v1715_v26, %v1673_v45 }
 0x231   : > { %v1745_v24 = vadd.f32 %v1716_v36, %v1334_v28  ;;  %v3453_v53 = vpop.f32.mrf.mxu2  ;;  %v1344_v28 = vadd.f32 %v3428_v32, %v3384_v33 }
 0x233   : > { %v2571_v47 = vpack.c.bf16 %v1745_v24, %v1744_v14  ;;  %v1836_v15 = vmul.f32 %v1786_v41, %v1745_v24 }
 0x234   : > { %v1632_v19 = vpop.f32.mrf.mxu3 }
 0x235   : > { %2593 = vst [vmem:[%s3443_s25 + $0x8] sm:$0xff] %v2571_v47   ;;  %v1874_v59 = vadd.f32 %v1873_v4, %v1836_v15  ;;  %v1894_v18 = vmul.f32 %v1836_v15, %v1745_v24  ;;  %v1676_v20 = vadd.f32 %v3352_v31, %v1632_v19  ;;  %v1796_v6 = vpop.permute.xlu2 %1795 }
 0x236   : > { %v1725_v10 = vpop.f32.mrf.mxu1 }
 0x237   : > { %v1906_v27 = vadd.f32 %v1905_v37, %v1894_v18  ;;  %v1719_v48 = vadd.f32 %v1718_v9, %v1676_v20 }
 0x239   : > { %v1746_v1 = vadd.f32 %v1719_v48, %v3408_v21  ;;  %v3458_v63 = vpop.f32.mrf.mxu2 }
 0x23b   : > { %v1837_v26 = vmul.f32 %v1791_v13, %v1746_v1 }
 0x23c   : > { %v1634_v60 = vpop.f32.mrf.mxu3 }
 0x23d   : > { %v1875_v54 = vadd.f32 %v1874_v59, %v1837_v26  ;;  %v1895_v61 = vmul.f32 %v1837_v26, %v1746_v1  ;;  %v1678_v29 = vadd.f32 %v3366_v51, %v1634_v60  ;;  %v1811_v13 = vpop.permute.xlu2 %1810  ;;  %v1349_v26 = vadd.f32 %v3436_v0, %v3402_v57 }
 0x23e   : > { %v1728_v30 = vpop.f32.mrf.mxu1 }
 0x23f   : > { %v1907_v31 = vadd.f32 %v1906_v27, %v1895_v61  ;;  %v1721_v40 = vadd.f32 %v1720_v52, %v1678_v29  ;;  %v1816_v61 = vpop.permute.xlu0 %1815 }
 0x241   : > { %v1747_v34 = vadd.f32 %v1721_v40, %v1339_v44  ;;  %v1358_v9 = vpop.f32.mrf.mxu2 }
 0x243   : > { %v2576_v55 = vpack.c.bf16 %v1747_v34, %v1746_v1  ;;  %v1838_v21 = vmul.f32 %v1796_v6, %v1747_v34 }
 0x244   : > { %v1637_v50 = vpop.f32.mrf.mxu3 }
 0x245   : > { %2594 = vst [vmem:[%s3443_s25 + $0x10] sm:$0xff] %v2576_v55   ;;  %v1876_v62 = vadd.f32 %v1875_v54, %v1838_v21  ;;  %v1896_v2 = vmul.f32 %v1838_v21, %v1747_v34  ;;  %v1681_v56 = vadd.f32 %v3373_v35, %v1637_v50  ;;  %v1806_v35 = vpop.permute.xlu1 %1805 }
 0x246   : > { %v1730_v14 = vpop.f32.mrf.mxu1 }
 0x247   : > { %v1908_v12 = vadd.f32 %v1907_v31, %v1896_v2  ;;  %v1724_v51 = vadd.f32 %v1723_v38, %v1681_v56  ;;  %v1354_v2 = vadd.f32 %v3453_v53, %v3416_v5  ;;  %v1831_v5 = vpop.permute.xlu0 %1830 }
 0x249   : > { %v1748_v25 = vadd.f32 %v1724_v51, %v3424_v39 }
 0x24b   : > { %v1839_v17 = vmul.f32 %v1801_v3, %v1748_v25 }
 0x24c   : > { %v1639_v52 = vpop.f32.mrf.mxu3 }
 0x24d   : > { %v1877_v16 = vadd.f32 %v1876_v62, %v1839_v17  ;;  %v1897_v4 = vmul.f32 %v1839_v17, %v1748_v25  ;;  %v1683_v8 = vadd.f32 %v3386_v11, %v1639_v52  ;;  %v1821_v55 = vpop.permute.xlu1 %1820 }
 0x24e   : > { %v1733_v45 = vpop.f32.mrf.mxu1 }
 0x24f   : > { %v1909_v37 = vadd.f32 %v1908_v12, %v1897_v4  ;;  %v1726_v36 = vadd.f32 %v1725_v10, %v1683_v8 }
 0x251   : > { %v1749_v41 = vadd.f32 %v1726_v36, %v1344_v28 }
 0x253   : > { %v2581_v24 = vpack.c.bf16 %v1749_v41, %v1748_v25  ;;  %v1840_v38 = vmul.f32 %v1806_v35, %v1749_v41 }
 0x254   : > { %v1642_v47 = vpop.f32.mrf.mxu3 }
 0x255   : > { %2595 = vst [vmem:[%s3443_s25 + $0x18] sm:$0xff] %v2581_v24   ;;  %v1878_v15 = vadd.f32 %v1877_v16, %v1840_v38  ;;  %v1898_v39 = vmul.f32 %v1840_v38, %v1749_v41  ;;  %v1686_v19 = vadd.f32 %v3396_v23, %v1642_v47  ;;  %v1357_v16 = vadd.f32 %v3458_v63, %v3422_v7 }
 0x256   : > { %v1735_v59 = vpop.f32.mrf.mxu1 }
 0x257   : > { %v1910_v18 = vadd.f32 %v1909_v37, %v1898_v39  ;;  %v1729_v20 = vadd.f32 %v1728_v30, %v1686_v19 }
 0x259   : > { %v1750_v11 = vadd.f32 %v1729_v20, %v3431_v42 }
 0x25b   : > { %v1841_v33 = vmul.f32 %v1811_v13, %v1750_v11 }
 0x25c   : > { %v1644_v32 = vpop.f32.mrf.mxu3 }
 0x25d   : > { %v1879_v10 = vadd.f32 %v1878_v15, %v1841_v33  ;;  %v1899_v27 = vmul.f32 %v1841_v33, %v1750_v11  ;;  %v1688_v48 = vadd.f32 %v3404_v22, %v1644_v32 }
 0x25e   : > { %v1738_v1 = vpop.f32.mrf.mxu1 }
 0x25f   : > { %v1911_v60 = vadd.f32 %v1910_v18, %v1899_v27  ;;  %v1731_v54 = vadd.f32 %v1730_v14, %v1688_v48 }
 0x261   : > { %v1751_v23 = vadd.f32 %v1731_v54, %v1349_v26 }
 0x263   : > { %v1842_v29 = vmul.f32 %v1816_v61, %v1751_v23  ;;  %v2586_v30 = vpack.c.bf16 %v1751_v23, %v1750_v11 }
 0x264   : > { %v1647_v44 = vpop.f32.mrf.mxu3 }
 0x265   : > { %2596 = vst [vmem:[%s3443_s25 + $0x20] sm:$0xff] %v2586_v30   ;;  %v1880_v42 = vadd.f32 %v1879_v10, %v1842_v29  ;;  %v1900_v31 = vmul.f32 %v1842_v29, %v1751_v23  ;;  %v1691_v40 = vadd.f32 %v3410_v43, %v1647_v44  ;;  %v1826_v43 = vpop.permute.xlu2 %1825 }
 0x266   : > { %v1740_v6 = vpop.f32.mrf.mxu1 }
 0x267   : > { %v1912_v34 = vadd.f32 %v1911_v60, %v1900_v31  ;;  %v1734_v9 = vadd.f32 %v1733_v45, %v1691_v40 }
 0x269   : > { %v1752_v22 = vadd.f32 %v1734_v9, %v3448_v49 }
 0x26b   : > { %v1843_v57 = vmul.f32 %v1821_v55, %v1752_v22 }
 0x26c   : > { %v1649_v0 = vpop.f32.mrf.mxu3 }
 0x26d   : > { %v1881_v21 = vadd.f32 %v1880_v42, %v1843_v57  ;;  %v1901_v50 = vmul.f32 %v1843_v57, %v1752_v22  ;;  %v1693_v62 = vadd.f32 %v3418_v58, %v1649_v0 }
 0x26f   : > { %v1913_v56 = vadd.f32 %v1912_v34, %v1901_v50  ;;  %v1736_v14 = vadd.f32 %v1735_v59, %v1693_v62 }
 0x271   : > { %v1753_v12 = vadd.f32 %v1736_v14, %v1354_v2 }
 0x273   : > { %v1844_v51 = vmul.f32 %v1826_v43, %v1753_v12  ;;  %v2591_v3 = vpack.c.bf16 %v1753_v12, %v1752_v22 }
 0x274   : > { %v1652_v25 = vpop.f32.mrf.mxu3 }
 0x275   : > { %2597 = vst [vmem:[%s3443_s25 + $0x28] sm:$0xff] %v2591_v3   ;;  %v1882_v49 = vadd.f32 %v1881_v21, %v1844_v51  ;;  %v1902_v17 = vmul.f32 %v1844_v51, %v1753_v12  ;;  %v1696_v52 = vadd.f32 %v3426_v46, %v1652_v25 }
 0x277   : > { %v1914_v58 = vadd.f32 %v1913_v56, %v1902_v17  ;;  %v1739_v4 = vadd.f32 %v1738_v1, %v1696_v52 }
 0x279   : > { %v1754_v8 = vadd.f32 %v1739_v4, %v1357_v16 }
 0x27b   : > { %v1845_v53 = vmul.f32 %v1831_v5, %v1754_v8  ;;  %v1858_v45 = vpack.c.bf16 %v1754_v8, %v1754_v8 }
 0x27c   : > { %v1654_v28 = vpop.f32.mrf.mxu3 }
 0x27d   : > { %1871 = vst [vmem:[%s3443_s25 + $0x30] sm:$0xf] %v1858_v45  ;;  %v1883_v37 = vadd.f32 %v1882_v49, %v1845_v53  ;;  %v1903_v36 = vmul.f32 %v1845_v53, %v1754_v8 }
 0x27f   : > { %v1884_v35 = vrot.slane %v1883_v37, 4  ;;  %v1915_v41 = vadd.f32 %v1914_v58, %v1903_v36 }
 0x281   : > { %v1885_v24 = vadd.f32 %v1884_v35, %v1883_v37  ;;  %v1916_v38 = vrot.slane %v1915_v41, 4 }
 0x283   : > { %v1886_v46 = vrot.slane %v1885_v24, 2  ;;  %v1917_v47 = vadd.f32 %v1916_v38, %v1915_v41 }
 0x285   : > { %v1887_v15 = vadd.f32 %v1886_v46, %v1885_v24  ;;  %v1918_v7 = vrot.slane %v1917_v47, 2 }
 0x287   : > { %v1888_v63 = vrot.slane %v1887_v15, 1  ;;  %v1919_v39 = vadd.f32 %v1918_v7, %v1917_v47 }
 0x289   : > { %v1889_v19 = vadd.f32 %v1888_v63, %v1887_v15  ;;  %v1920_v59 = vrot.slane %v1919_v39, 1 }
 0x28b   : > { %1890 = vst [vmem:[%s265_s27] sm:$0x1] %v1889_v19  ;;  %v1921_v18 = vadd.f32 %v1920_v59, %v1919_v39 }
 0x28d   : > { %1922 = vst [vmem:[%s268_s30] sm:$0x1] %v1921_v18 }
 0x28e PF: > { %s17_s21 = sadd.s32 1, %s2633_s21  }
 0x28f   : > { %p14_p4 = scmp.ge.s32.totalorder %s17_s21, 4  }
 0x291   :  { %16 = sbr.rel (!%p14_p4) target bundleno = 1 (0x1), region = 92 }

</bundles_post_ra>
